<compile_context>
chip_gen: v5e
topology: v5e:2x2
jax: 0.10.0
libtpu: 0.0.40
codegen_flags: <defaults>
</compile_context>

<pallas_src>
import functools

import jax
import jax.numpy as jnp
from jax.experimental import pallas as pl
from jax.experimental.pallas import tpu as pltpu

_LANE = 128
_MIB = 1024 * 1024
_RESIDENT_B_BUDGET = 4 * _MIB   # per-buffer cap for a K-resident B operand
_NEG_BIG = -1e30                # masks padded class columns in log_softmax


# ----------------------------------------------------------------------------
# helpers
# ----------------------------------------------------------------------------
def _round_up(x, m):
    return ((x + m - 1) // m) * m


def _divisor_tile(dim, target):
    """Largest tile in {1024,512,256,128} dividing `dim` and <= target."""
    for cand in (1024, 512, 256, 128):
        if cand <= target and dim % cand == 0:
            return cand
    return 128


def _m_tile(dim, target=512):
    # Prefer >= 2 row blocks so both v7x TensorCores get work.
    return _divisor_tile(dim, min(target, max(_LANE, dim // 2)))


def _pad_to(x, rows, cols, value=0.0):
    r, c = x.shape
    if r == rows and c == cols:
        return x
    return jnp.pad(x, ((0, rows - r), (0, cols - c)), constant_values=value)


def _vmem_limit(*nbytes):
    need = int(sum(nbytes))
    return int(min(max(2 * need, 16 * _MIB), 48 * _MIB))


# ----------------------------------------------------------------------------
# Generic tiled matmul: O = act(A @ B [+ bias]); f32 scratch accumulator,
# output written once in the last-k epilogue in out_dtype.
# ----------------------------------------------------------------------------
def _mm_kernel(a_ref, b_ref, o_ref, acc_ref, *, tk, b_resident):
    k = pl.program_id(2)

    @pl.when(k == 0)
    def _():
        acc_ref[...] = jnp.zeros_like(acc_ref)

    if b_resident:
        start = pl.multiple_of(k * tk, tk)
        b_blk = b_ref[pl.ds(start, tk), :]
    else:
        b_blk = b_ref[...]
    acc_ref[...] += jnp.dot(a_ref[...], b_blk,
                            preferred_element_type=jnp.float32)

    @pl.when(k == pl.num_programs(2) - 1)
    def _():
        o_ref[...] = acc_ref[...].astype(o_ref.dtype)


def _mm_bias_kernel(a_ref, b_ref, bias_ref, o_ref, acc_ref, *, tk, b_resident,
                    apply_relu):
    k = pl.program_id(2)

    @pl.when(k == 0)
    def _():
        acc_ref[...] = jnp.zeros_like(acc_ref)

    if b_resident:
        start = pl.multiple_of(k * tk, tk)
        b_blk = b_ref[pl.ds(start, tk), :]
    else:
        b_blk = b_ref[...]
    acc_ref[...] += jnp.dot(a_ref[...], b_blk,
                            preferred_element_type=jnp.float32)

    @pl.when(k == pl.num_programs(2) - 1)
    def _():
        out = acc_ref[...] + bias_ref[...]
        if apply_relu:
            out = jnp.maximum(out, 0.0)
        o_ref[...] = out.astype(o_ref.dtype)


def matmul(a, b, bias=None, *, apply_relu=False, out_dtype=jnp.float32,
           b_resident=None, tm=512, tn=512, tk=512):
    """act(a @ b [+ bias]); inputs already padded to multiples of 128."""
    M, K = a.shape
    K2, N = b.shape
    assert K == K2 and M % _LANE == 0 and K % _LANE == 0 and N % _LANE == 0

    tm = _m_tile(M, tm)
    tn = _divisor_tile(N, tn)
    tk = _divisor_tile(K, tk)
    grid = (M // tm, N // tn, K // tk)

    if b_resident is None:
        b_resident = K * tn * b.dtype.itemsize <= _RESIDENT_B_BUDGET
    b_resident = bool(b_resident)

    a_spec = pl.BlockSpec((tm, tk), lambda i, j, k: (i, k))
    if b_resident:
        b_spec = pl.BlockSpec((K, tn), lambda i, j, k: (0, j))
        b_block_bytes = K * tn * b.dtype.itemsize
    else:
        b_spec = pl.BlockSpec((tk, tn), lambda i, j, k: (k, j))
        b_block_bytes = tk * tn * b.dtype.itemsize
    o_spec = pl.BlockSpec((tm, tn), lambda i, j, k: (i, j))

    out_dtype = jnp.dtype(out_dtype)
    vmem_limit = _vmem_limit(2 * tm * tk * a.dtype.itemsize,
                             2 * b_block_bytes,
                             2 * tm * tn * out_dtype.itemsize,
                             tm * tn * 4,
                             2 * tn * 4)

    if bias is not None:
        kernel = functools.partial(_mm_bias_kernel, tk=tk,
                                   b_resident=b_resident,
                                   apply_relu=apply_relu)
        in_specs = [a_spec, b_spec,
                    pl.BlockSpec((1, tn), lambda i, j, k: (0, j))]
        args = (a, b, bias)
    else:
        kernel = functools.partial(_mm_kernel, tk=tk, b_resident=b_resident)
        in_specs = [a_spec, b_spec]
        args = (a, b)

    return pl.pallas_call(
        kernel,
        out_shape=jax.ShapeDtypeStruct((M, N), out_dtype),
        grid_spec=pltpu.PrefetchScalarGridSpec(
            num_scalar_prefetch=0,
            grid=grid,
            in_specs=in_specs,
            out_specs=o_spec,
            scratch_shapes=[pltpu.VMEM((tm, tn), jnp.float32)]),
        compiler_params=pltpu.CompilerParams(
            dimension_semantics=("parallel", "parallel", "arbitrary"),
            vmem_limit_bytes=vmem_limit),
    )(*args)


# ----------------------------------------------------------------------------
# Fused layer 2:  log_softmax((adj @ h) @ W2 + b2, axis=1)
# adj@h is accumulated per row-tile in an f32 scratch; the last-k epilogue
# multiplies by the VMEM-resident W2, adds b2 (-1e30 in padded class columns)
# and applies log_softmax over the lane-dense padded class dim.
# ----------------------------------------------------------------------------
def _gc2_logsoftmax_kernel(adj_ref, h_ref, w2_ref, b2_ref, o_ref, acc_ref, *,
                           tk, h_resident):
    k = pl.program_id(1)

    @pl.when(k == 0)
    def _():
        acc_ref[...] = jnp.zeros_like(acc_ref)

    if h_resident:
        start = pl.multiple_of(k * tk, tk)
        h_blk = h_ref[pl.ds(start, tk), :]
    else:
        h_blk = h_ref[...]
    acc_ref[...] += jnp.dot(adj_ref[...], h_blk,
                            preferred_element_type=jnp.float32)

    @pl.when(k == pl.num_programs(1) - 1)
    def _():
        ah = acc_ref[...].astype(w2_ref.dtype)
        logits = jnp.dot(ah, w2_ref[...],
                         preferred_element_type=jnp.float32) + b2_ref[...]
        m = jnp.max(logits, axis=-1, keepdims=True)
        s = logits - m
        lse = jnp.log(jnp.sum(jnp.exp(s), axis=-1, keepdims=True))
        o_ref[...] = (s - lse).astype(o_ref.dtype)


def gc2_logsoftmax(adj, h, w2, b2, *, b_resident=None, tm=512, tk=512):
    M, K = adj.shape
    K2, H = h.shape
    H2, C = w2.shape
    assert K == K2 and H == H2
    assert M % _LANE == 0 and K % _LANE == 0 and H % _LANE == 0 and C % _LANE == 0

    tm = _m_tile(M, tm)
    tk = _divisor_tile(K, tk)
    grid = (M // tm, K // tk)

    if b_resident is None:
        h_resident = K * H * h.dtype.itemsize <= _RESIDENT_B_BUDGET
    else:
        h_resident = bool(b_resident)

    if h_resident:
        h_spec = pl.BlockSpec((K, H), lambda i, k: (0, 0))
        h_block_bytes = K * H * h.dtype.itemsize
    else:
        h_spec = pl.BlockSpec((tk, H), lambda i, k: (k, 0))
        h_block_bytes = tk * H * h.dtype.itemsize

    vmem_limit = _vmem_limit(2 * tm * tk * adj.dtype.itemsize,
                             2 * h_block_bytes,
                             2 * H * C * w2.dtype.itemsize,
                             2 * C * 4,
                             2 * tm * C * 4,
                             tm * H * 4)

    return pl.pallas_call(
        functools.partial(_gc2_logsoftmax_kernel, tk=tk, h_resident=h_resident),
        out_shape=jax.ShapeDtypeStruct((M, C), jnp.float32),
        grid_spec=pltpu.PrefetchScalarGridSpec(
            num_scalar_prefetch=0,
            grid=grid,
            in_specs=[
                pl.BlockSpec((tm, tk), lambda i, k: (i, k)),
                h_spec,
                pl.BlockSpec((H, C), lambda i, k: (0, 0)),
                pl.BlockSpec((1, C), lambda i, k: (0, 0)),
            ],
            out_specs=pl.BlockSpec((tm, C), lambda i, k: (i, 0)),
            scratch_shapes=[pltpu.VMEM((tm, H), jnp.float32)]),
        compiler_params=pltpu.CompilerParams(
            dimension_semantics=("parallel", "arbitrary"),
            vmem_limit_bytes=vmem_limit),
    )(adj, h, w2, b2)


# ----------------------------------------------------------------------------
# RawlsGCNGraph forward
# ----------------------------------------------------------------------------
def rawls_gcn_graph_forward(x, adj, params, *, dropout=0.5, training=False,
                            compute_dtype=jnp.bfloat16, b_resident=None):
    """Inference forward pass.

    compute_dtype: matmul-input dtype for adj / activations / weights
    (default bf16; MXU accumulation is always float32).
    b_resident: None = auto (hold the small B operand whole in VMEM when it
    fits), True/False = force.
    """
    del dropout  # F.dropout(..., training=False) is the identity.
    # TODO(synk): training-mode dropout (needs an RNG mask) is not implemented.
    assert not training

    n, nfeat = x.shape
    nhid = params["w1"].shape[1]
    nclass = params["w2"].shape[1]
    cd = jnp.dtype(compute_dtype)

    np_ = _round_up(n, _LANE)
    fp = _round_up(nfeat, _LANE)
    hp = _round_up(nhid, _LANE)
    cp = _round_up(nclass, _LANE)

    # Pad + cast every operand exactly once.  Padded intermediates are carried
    # between layers; correctness relies on adj's padded columns being exactly
    # zero so padded activation rows (e.g. relu(b1)) contribute nothing.
    x_p = _pad_to(x.astype(cd), np_, fp)
    adj_p = _pad_to(adj.astype(cd), np_, np_)
    w1_p = _pad_to(params["w1"].astype(cd), fp, hp)
    b1_p = _pad_to(params["b1"].reshape(1, -1).astype(jnp.float32), 1, hp)
    w2_p = _pad_to(params["w2"].astype(cd), hp, cp)
    # Padded class columns get -1e30 so they fall out of the log_softmax.
    b2_p = _pad_to(params["b2"].reshape(1, -1).astype(jnp.float32), 1, cp,
                   value=_NEG_BIG)

    # layer 1: h = relu(adj @ (x @ W1) + b1)
    s1 = matmul(x_p, w1_p, out_dtype=cd, b_resident=b_resident)        # (Np,Hp)
    h = matmul(adj_p, s1, bias=b1_p, apply_relu=True, out_dtype=cd,
               b_resident=b_resident)                                   # (Np,Hp)
    # layer 2 (fused projection + bias + log_softmax)
    out = gc2_logsoftmax(adj_p, h, w2_p, b2_p, b_resident=b_resident)   # (Np,Cp)
    return out[:n, :nclass]


def init_params(key, nfeat, nhid, nclass):
    """uniform(-stdv, stdv) with stdv = 1/sqrt(fan_out), like GCNLayer."""
    k1, k2, k3, k4 = jax.random.split(key, 4)
    s1 = 1.0 / jnp.sqrt(nhid)
    s2 = 1.0 / jnp.sqrt(nclass)
    return {
        "w1": jax.random.uniform(k1, (nfeat, nhid), jnp.float32, -s1, s1),
        "b1": jax.random.uniform(k2, (nhid,), jnp.float32, -s1, s1),
        "w2": jax.random.uniform(k3, (nhid, nclass), jnp.float32, -s2, s2),
        "b2": jax.random.uniform(k4, (nclass,), jnp.float32, -s2, s2),
    }


if __name__ == "__main__":
    # Small synthetic graph with intentionally non-tile-aligned sizes to
    # exercise the padding path.
    N, nfeat, nhid, nclass = 200, 96, 64, 7

    key = jax.random.PRNGKey(0)
    kx, ka, kp = jax.random.split(key, 3)

    x = jax.random.normal(kx, (N, nfeat), jnp.float32)
    # symmetric row-normalized adjacency with self loops (dense)
    a_raw = (jax.random.uniform(ka, (N, N)) < 0.05).astype(jnp.float32)
    a_sym = jnp.maximum(a_raw, a_raw.T) + jnp.eye(N, dtype=jnp.float32)
    adj = a_sym / jnp.sum(a_sym, axis=1, keepdims=True)

    params = init_params(kp, nfeat, nhid, nclass)

    # Pure-JAX reference (f32).
    def ref_forward(x, adj, p):
        h = jnp.maximum(adj @ (x @ p["w1"]) + p["b1"], 0.0)
        o = adj @ (h @ p["w2"]) + p["b2"]
        return jax.nn.log_softmax(o, axis=1)

    ref = ref_forward(x, adj, params)

    # 1) f32 compute path, resident-B (auto) -> tight correctness check.
    f32_fwd = jax.jit(functools.partial(rawls_gcn_graph_forward,
                                        compute_dtype=jnp.float32))
    out_f32 = jax.block_until_ready(f32_fwd(x, adj, params))
    assert out_f32.shape == (N, nclass)
    err = float(jnp.max(jnp.abs(out_f32 - ref)))
    assert jnp.allclose(out_f32, ref, atol=5e-4, rtol=5e-4), err

    # 2) f32 compute path, streamed-B forced -> exercises the other codepath.
    f32_stream_fwd = jax.jit(functools.partial(rawls_gcn_graph_forward,
                                               compute_dtype=jnp.float32,
                                               b_resident=False))
    out_f32s = jax.block_until_ready(f32_stream_fwd(x, adj, params))
    err_s = float(jnp.max(jnp.abs(out_f32s - ref)))
    assert jnp.allclose(out_f32s, ref, atol=5e-4, rtol=5e-4), err_s

    # 3) default bf16 compute path (looser tolerance due to input quantization).
    bf16_fwd = jax.jit(rawls_gcn_graph_forward)
    out_bf16 = jax.block_until_ready(bf16_fwd(x, adj, params))
    assert out_bf16.shape == (N, nclass)
    err_b = float(jnp.max(jnp.abs(out_bf16 - ref)))
    assert jnp.allclose(out_bf16, ref, atol=1e-1, rtol=1e-1), err_b

    print("KERNEL_OK")
</pallas_src>

<mosaic_0001>
module attributes {stable_mosaic.version = 11 : i64} {
  func.func @_mm_kernel(%arg0: i32, %arg1: i32, %arg2: i32, %arg3: memref<128x128xf32, #tpu.memory_space<vmem>>, %arg4: memref<128x128xf32, #tpu.memory_space<vmem>>, %arg5: memref<128x128xf32, #tpu.memory_space<vmem>>, %arg6: memref<128x128xf32, #tpu.memory_space<vmem>>) attributes {dimension_semantics = [#tpu.dimension_semantics<parallel>, #tpu.dimension_semantics<parallel>, #tpu.dimension_semantics<arbitrary>], iteration_bounds = array<i64: 2, 1, 1>, scalar_prefetch = 0 : i64, scratch_operands = 1 : i64, tpu.core_type = #tpu.core_type<tc>, window_params = [{transform_indices = @transform_0, window_bounds = array<i64: 128, 128>}, {transform_indices = @transform_1, window_bounds = array<i64: 128, 128>}, {transform_indices = @transform_2, window_bounds = array<i64: 128, 128>}]} {
    %c0_i32 = arith.constant 0 : i32
    %0 = arith.cmpi eq, %arg2, %c0_i32 : i32
    %1 = arith.extui %0 : i1 to i32
    %c0_i32_0 = arith.constant 0 : i32
    %2 = arith.cmpi ne, %1, %c0_i32_0 : i32
    scf.if %2 {
      %cst_9 = arith.constant 0.000000e+00 : f32
      %15 = vector.broadcast %cst_9 : f32 to vector<128x128xf32>
      %c0_10 = arith.constant 0 : index
      %c0_11 = arith.constant 0 : index
      %16 = vector.load %arg6[%c0_10, %c0_11] : memref<128x128xf32, #tpu.memory_space<vmem>>, vector<128x128xf32>
      tpu.vector_store %arg6[%c0_10, %c0_11], %15 {strides = array<i32>} : memref<128x128xf32, #tpu.memory_space<vmem>>, vector<128x128xf32>,
    } else {
    }
    %c128_i32 = arith.constant 128 : i32
    %3 = arith.muli %arg2, %c128_i32 : i32
    %4 = tpu.assume_multiple %3, 128 : i32
    %5 = arith.index_cast %4 : i32 to index
    %c0 = arith.constant 0 : index
    %6 = vector.load %arg4[%5, %c0] : memref<128x128xf32, #tpu.memory_space<vmem>>, vector<128x128xf32>
    %c0_1 = arith.constant 0 : index
    %c0_2 = arith.constant 0 : index
    %7 = vector.load %arg6[%c0_1, %c0_2] : memref<128x128xf32, #tpu.memory_space<vmem>>, vector<128x128xf32>
    %c0_3 = arith.constant 0 : index
    %c0_4 = arith.constant 0 : index
    %8 = vector.load %arg3[%c0_3, %c0_4] : memref<128x128xf32, #tpu.memory_space<vmem>>, vector<128x128xf32>
    %cst = arith.constant dense<0.000000e+00> : vector<128x128xf32>
    %9 = tpu.matmul %8, %6, %cst {dimension_numbers = #tpu.dot_dimension_numbers<[1], [0], [0], [1], [0, 0, 1, 1], [], []>} : vector<128x128xf32>, vector<128x128xf32>, vector<128x128xf32> -> vector<128x128xf32>
    %10 = arith.addf %7, %9 : vector<128x128xf32>
    %c0_5 = arith.constant 0 : index
    %c0_6 = arith.constant 0 : index
    %11 = vector.load %arg6[%c0_5, %c0_6] : memref<128x128xf32, #tpu.memory_space<vmem>>, vector<128x128xf32>
    tpu.vector_store %arg6[%c0_5, %c0_6], %10 {strides = array<i32>} : memref<128x128xf32, #tpu.memory_space<vmem>>, vector<128x128xf32>,
    %c0_i32_7 = arith.constant 0 : i32
    %12 = arith.cmpi eq, %arg2, %c0_i32_7 : i32
    %13 = arith.extui %12 : i1 to i32
    %c0_i32_8 = arith.constant 0 : i32
    %14 = arith.cmpi ne, %13, %c0_i32_8 : i32
    scf.if %14 {
      %c0_9 = arith.constant 0 : index
      %c0_10 = arith.constant 0 : index
      %15 = vector.load %arg6[%c0_9, %c0_10] : memref<128x128xf32, #tpu.memory_space<vmem>>, vector<128x128xf32>
      %c0_11 = arith.constant 0 : index
      %c0_12 = arith.constant 0 : index
      %16 = vector.load %arg5[%c0_11, %c0_12] : memref<128x128xf32, #tpu.memory_space<vmem>>, vector<128x128xf32>
      tpu.vector_store %arg5[%c0_11, %c0_12], %15 {strides = array<i32>} : memref<128x128xf32, #tpu.memory_space<vmem>>, vector<128x128xf32>,
    } else {
    }
    return
  }
  func.func @transform_0(%arg0: i32, %arg1: i32, %arg2: i32) -> (i32, i32) {
    %c0_i32 = arith.constant 0 : i32
    return %arg0, %arg2 : i32, i32
  }
  func.func @transform_1(%arg0: i32, %arg1: i32, %arg2: i32) -> (i32, i32) {
    %c0_i32 = arith.constant 0 : i32
    %c0_i32_0 = arith.constant 0 : i32
    return %c0_i32, %arg1 : i32, i32
  }
  func.func @transform_2(%arg0: i32, %arg1: i32, %arg2: i32) -> (i32, i32) {
    %c0_i32 = arith.constant 0 : i32
    return %arg0, %arg1 : i32, i32
  }
}

module attributes {stable_mosaic.version = 11 : i64} {
  func.func @_mm_bias_kernel(%arg0: i32, %arg1: i32, %arg2: i32, %arg3: memref<128x256xf32, #tpu.memory_space<vmem>>, %arg4: memref<256x128xf32, #tpu.memory_space<vmem>>, %arg5: memref<1x128xf32, #tpu.memory_space<vmem>>, %arg6: memref<128x128xf32, #tpu.memory_space<vmem>>, %arg7: memref<128x128xf32, #tpu.memory_space<vmem>>) attributes {dimension_semantics = [#tpu.dimension_semantics<parallel>, #tpu.dimension_semantics<parallel>, #tpu.dimension_semantics<arbitrary>], iteration_bounds = array<i64: 2, 1, 1>, scalar_prefetch = 0 : i64, scratch_operands = 1 : i64, tpu.core_type = #tpu.core_type<tc>, window_params = [{transform_indices = @transform_0, window_bounds = array<i64: 128, 256>}, {transform_indices = @transform_1, window_bounds = array<i64: 256, 128>}, {transform_indices = @transform_2, window_bounds = array<i64: 1, 128>}, {transform_indices = @transform_3, window_bounds = array<i64: 128, 128>}]} {
    %c0_i32 = arith.constant 0 : i32
    %0 = arith.cmpi eq, %arg2, %c0_i32 : i32
    %1 = arith.extui %0 : i1 to i32
    %c0_i32_0 = arith.constant 0 : i32
    %2 = arith.cmpi ne, %1, %c0_i32_0 : i32
    scf.if %2 {
      %cst_9 = arith.constant 0.000000e+00 : f32
      %15 = vector.broadcast %cst_9 : f32 to vector<128x128xf32>
      %c0_10 = arith.constant 0 : index
      %c0_11 = arith.constant 0 : index
      %16 = vector.load %arg7[%c0_10, %c0_11] : memref<128x128xf32, #tpu.memory_space<vmem>>, vector<128x128xf32>
      tpu.vector_store %arg7[%c0_10, %c0_11], %15 {strides = array<i32>} : memref<128x128xf32, #tpu.memory_space<vmem>>, vector<128x128xf32>,
    } else {
    }
    %c256_i32 = arith.constant 256 : i32
    %3 = arith.muli %arg2, %c256_i32 : i32
    %4 = tpu.assume_multiple %3, 256 : i32
    %5 = arith.index_cast %4 : i32 to index
    %c0 = arith.constant 0 : index
    %6 = vector.load %arg4[%5, %c0] : memref<256x128xf32, #tpu.memory_space<vmem>>, vector<256x128xf32>
    %c0_1 = arith.constant 0 : index
    %c0_2 = arith.constant 0 : index
    %7 = vector.load %arg7[%c0_1, %c0_2] : memref<128x128xf32, #tpu.memory_space<vmem>>, vector<128x128xf32>
    %c0_3 = arith.constant 0 : index
    %c0_4 = arith.constant 0 : index
    %8 = vector.load %arg3[%c0_3, %c0_4] : memref<128x256xf32, #tpu.memory_space<vmem>>, vector<128x256xf32>
    %cst = arith.constant dense<0.000000e+00> : vector<128x128xf32>
    %9 = tpu.matmul %8, %6, %cst {dimension_numbers = #tpu.dot_dimension_numbers<[1], [0], [0], [1], [0, 0, 1, 1], [], []>} : vector<128x256xf32>, vector<256x128xf32>, vector<128x128xf32> -> vector<128x128xf32>
    %10 = arith.addf %7, %9 : vector<128x128xf32>
    %c0_5 = arith.constant 0 : index
    %c0_6 = arith.constant 0 : index
    %11 = vector.load %arg7[%c0_5, %c0_6] : memref<128x128xf32, #tpu.memory_space<vmem>>, vector<128x128xf32>
    tpu.vector_store %arg7[%c0_5, %c0_6], %10 {strides = array<i32>} : memref<128x128xf32, #tpu.memory_space<vmem>>, vector<128x128xf32>,
    %c0_i32_7 = arith.constant 0 : i32
    %12 = arith.cmpi eq, %arg2, %c0_i32_7 : i32
    %13 = arith.extui %12 : i1 to i32
    %c0_i32_8 = arith.constant 0 : i32
    %14 = arith.cmpi ne, %13, %c0_i32_8 : i32
    scf.if %14 {
      %c0_9 = arith.constant 0 : index
      %c0_10 = arith.constant 0 : index
      %15 = vector.load %arg7[%c0_9, %c0_10] : memref<128x128xf32, #tpu.memory_space<vmem>>, vector<128x128xf32>
      %c0_11 = arith.constant 0 : index
      %c0_12 = arith.constant 0 : index
      %16 = vector.load %arg5[%c0_11, %c0_12] : memref<1x128xf32, #tpu.memory_space<vmem>>, vector<1x128xf32>
      %17 = vector.broadcast %16 : vector<1x128xf32> to vector<128x128xf32>
      %18 = arith.addf %15, %17 : vector<128x128xf32>
      %cst_13 = arith.constant 0.000000e+00 : f32
      %19 = vector.broadcast %cst_13 : f32 to vector<128x128xf32>
      %20 = arith.maximumf %18, %19 : vector<128x128xf32>
      %c0_14 = arith.constant 0 : index
      %c0_15 = arith.constant 0 : index
      %21 = vector.load %arg6[%c0_14, %c0_15] : memref<128x128xf32, #tpu.memory_space<vmem>>, vector<128x128xf32>
      tpu.vector_store %arg6[%c0_14, %c0_15], %20 {strides = array<i32>} : memref<128x128xf32, #tpu.memory_space<vmem>>, vector<128x128xf32>,
    } else {
    }
    return
  }
  func.func @transform_0(%arg0: i32, %arg1: i32, %arg2: i32) -> (i32, i32) {
    %c0_i32 = arith.constant 0 : i32
    return %arg0, %arg2 : i32, i32
  }
  func.func @transform_1(%arg0: i32, %arg1: i32, %arg2: i32) -> (i32, i32) {
    %c0_i32 = arith.constant 0 : i32
    %c0_i32_0 = arith.constant 0 : i32
    return %c0_i32, %arg1 : i32, i32
  }
  func.func @transform_2(%arg0: i32, %arg1: i32, %arg2: i32) -> (i32, i32) {
    %c0_i32 = arith.constant 0 : i32
    %c0_i32_0 = arith.constant 0 : i32
    return %c0_i32, %arg1 : i32, i32
  }
  func.func @transform_3(%arg0: i32, %arg1: i32, %arg2: i32) -> (i32, i32) {
    %c0_i32 = arith.constant 0 : i32
    return %arg0, %arg1 : i32, i32
  }
}

module attributes {stable_mosaic.version = 11 : i64} {
  func.func @_gc2_logsoftmax_kernel(%arg0: i32, %arg1: i32, %arg2: memref<128x256xf32, #tpu.memory_space<vmem>>, %arg3: memref<256x128xf32, #tpu.memory_space<vmem>>, %arg4: memref<128x128xf32, #tpu.memory_space<vmem>>, %arg5: memref<1x128xf32, #tpu.memory_space<vmem>>, %arg6: memref<128x128xf32, #tpu.memory_space<vmem>>, %arg7: memref<128x128xf32, #tpu.memory_space<vmem>>) attributes {dimension_semantics = [#tpu.dimension_semantics<parallel>, #tpu.dimension_semantics<arbitrary>], iteration_bounds = array<i64: 2, 1>, scalar_prefetch = 0 : i64, scratch_operands = 1 : i64, tpu.core_type = #tpu.core_type<tc>, window_params = [{transform_indices = @transform_0, window_bounds = array<i64: 128, 256>}, {pipeline_mode = #tpu.pipeline_mode<synchronous>, transform_indices = @transform_1, window_bounds = array<i64: 256, 128>}, {pipeline_mode = #tpu.pipeline_mode<synchronous>, transform_indices = @transform_2, window_bounds = array<i64: 128, 128>}, {pipeline_mode = #tpu.pipeline_mode<synchronous>, transform_indices = @transform_3, window_bounds = array<i64: 1, 128>}, {transform_indices = @transform_4, window_bounds = array<i64: 128, 128>}]} {
    %c0_i32 = arith.constant 0 : i32
    %0 = arith.cmpi eq, %arg1, %c0_i32 : i32
    %1 = arith.extui %0 : i1 to i32
    %c0_i32_0 = arith.constant 0 : i32
    %2 = arith.cmpi ne, %1, %c0_i32_0 : i32
    scf.if %2 {
      %cst_9 = arith.constant 0.000000e+00 : f32
      %15 = vector.broadcast %cst_9 : f32 to vector<128x128xf32>
      %c0_10 = arith.constant 0 : index
      %c0_11 = arith.constant 0 : index
      %16 = vector.load %arg7[%c0_10, %c0_11] : memref<128x128xf32, #tpu.memory_space<vmem>>, vector<128x128xf32>
      tpu.vector_store %arg7[%c0_10, %c0_11], %15 {strides = array<i32>} : memref<128x128xf32, #tpu.memory_space<vmem>>, vector<128x128xf32>,
    } else {
    }
    %c256_i32 = arith.constant 256 : i32
    %3 = arith.muli %arg1, %c256_i32 : i32
    %4 = tpu.assume_multiple %3, 256 : i32
    %5 = arith.index_cast %4 : i32 to index
    %c0 = arith.constant 0 : index
    %6 = vector.load %arg3[%5, %c0] : memref<256x128xf32, #tpu.memory_space<vmem>>, vector<256x128xf32>
    %c0_1 = arith.constant 0 : index
    %c0_2 = arith.constant 0 : index
    %7 = vector.load %arg7[%c0_1, %c0_2] : memref<128x128xf32, #tpu.memory_space<vmem>>, vector<128x128xf32>
    %c0_3 = arith.constant 0 : index
    %c0_4 = arith.constant 0 : index
    %8 = vector.load %arg2[%c0_3, %c0_4] : memref<128x256xf32, #tpu.memory_space<vmem>>, vector<128x256xf32>
    %cst = arith.constant dense<0.000000e+00> : vector<128x128xf32>
    %9 = tpu.matmul %8, %6, %cst {dimension_numbers = #tpu.dot_dimension_numbers<[1], [0], [0], [1], [0, 0, 1, 1], [], []>} : vector<128x256xf32>, vector<256x128xf32>, vector<128x128xf32> -> vector<128x128xf32>
    %10 = arith.addf %7, %9 : vector<128x128xf32>
    %c0_5 = arith.constant 0 : index
    %c0_6 = arith.constant 0 : index
    %11 = vector.load %arg7[%c0_5, %c0_6] : memref<128x128xf32, #tpu.memory_space<vmem>>, vector<128x128xf32>
    tpu.vector_store %arg7[%c0_5, %c0_6], %10 {strides = array<i32>} : memref<128x128xf32, #tpu.memory_space<vmem>>, vector<128x128xf32>,
    %c0_i32_7 = arith.constant 0 : i32
    %12 = arith.cmpi eq, %arg1, %c0_i32_7 : i32
    %13 = arith.extui %12 : i1 to i32
    %c0_i32_8 = arith.constant 0 : i32
    %14 = arith.cmpi ne, %13, %c0_i32_8 : i32
    scf.if %14 {
      %c0_9 = arith.constant 0 : index
      %c0_10 = arith.constant 0 : index
      %15 = vector.load %arg7[%c0_9, %c0_10] : memref<128x128xf32, #tpu.memory_space<vmem>>, vector<128x128xf32>
      %c0_11 = arith.constant 0 : index
      %c0_12 = arith.constant 0 : index
      %16 = vector.load %arg4[%c0_11, %c0_12] : memref<128x128xf32, #tpu.memory_space<vmem>>, vector<128x128xf32>
      %cst_13 = arith.constant dense<0.000000e+00> : vector<128x128xf32>
      %17 = tpu.matmul %15, %16, %cst_13 {dimension_numbers = #tpu.dot_dimension_numbers<[1], [0], [0], [1], [0, 0, 1, 1], [], []>} : vector<128x128xf32>, vector<128x128xf32>, vector<128x128xf32> -> vector<128x128xf32>
      %c0_14 = arith.constant 0 : index
      %c0_15 = arith.constant 0 : index
      %18 = vector.load %arg5[%c0_14, %c0_15] : memref<1x128xf32, #tpu.memory_space<vmem>>, vector<1x128xf32>
      %19 = vector.broadcast %18 : vector<1x128xf32> to vector<128x128xf32>
      %20 = arith.addf %17, %19 : vector<128x128xf32>
      %cst_16 = arith.constant dense<0xFF800000> : vector<128xf32>
      %21 = vector.multi_reduction <maximumf>, %20, %cst_16 [1] : vector<128x128xf32> to vector<128xf32>
      %22 = vector.shape_cast %21 : vector<128xf32> to vector<128x1xf32>
      %23 = vector.broadcast %22 : vector<128x1xf32> to vector<128x128xf32>
      %24 = arith.subf %20, %23 : vector<128x128xf32>
      %25 = math.exp %24 : vector<128x128xf32>
      %cst_17 = arith.constant dense<0.000000e+00> : vector<128xf32>
      %26 = vector.multi_reduction <add>, %25, %cst_17 [1] : vector<128x128xf32> to vector<128xf32>
      %27 = vector.shape_cast %26 : vector<128xf32> to vector<128x1xf32>
      %28 = math.log %27 : vector<128x1xf32>
      %29 = vector.broadcast %28 : vector<128x1xf32> to vector<128x128xf32>
      %30 = arith.subf %24, %29 : vector<128x128xf32>
      %c0_18 = arith.constant 0 : index
      %c0_19 = arith.constant 0 : index
      %31 = vector.load %arg6[%c0_18, %c0_19] : memref<128x128xf32, #tpu.memory_space<vmem>>, vector<128x128xf32>
      tpu.vector_store %arg6[%c0_18, %c0_19], %30 {strides = array<i32>} : memref<128x128xf32, #tpu.memory_space<vmem>>, vector<128x128xf32>,
    } else {
    }
    return
  }
  func.func @transform_0(%arg0: i32, %arg1: i32) -> (i32, i32) {
    %c0_i32 = arith.constant 0 : i32
    return %arg0, %arg1 : i32, i32
  }
  func.func @transform_1(%arg0: i32, %arg1: i32) -> (i32, i32) {
    %c0_i32 = arith.constant 0 : i32
    %c0_i32_0 = arith.constant 0 : i32
    %c0_i32_1 = arith.constant 0 : i32
    return %c0_i32, %c0_i32_0 : i32, i32
  }
  func.func @transform_2(%arg0: i32, %arg1: i32) -> (i32, i32) {
    %c0_i32 = arith.constant 0 : i32
    %c0_i32_0 = arith.constant 0 : i32
    %c0_i32_1 = arith.constant 0 : i32
    return %c0_i32, %c0_i32_0 : i32, i32
  }
  func.func @transform_3(%arg0: i32, %arg1: i32) -> (i32, i32) {
    %c0_i32 = arith.constant 0 : i32
    %c0_i32_0 = arith.constant 0 : i32
    %c0_i32_1 = arith.constant 0 : i32
    return %c0_i32, %c0_i32_0 : i32, i32
  }
  func.func @transform_4(%arg0: i32, %arg1: i32) -> (i32, i32) {
    %c0_i32 = arith.constant 0 : i32
    %c0_i32_0 = arith.constant 0 : i32
    return %arg0, %c0_i32 : i32, i32
  }
}

</mosaic_0001>

<bundles_post_ra>
// kernel: rawls_gcn_graph_forward.3
= control target key start
LH: loop header
LB: loop body
LE: loop exit
PB: predicated region body
PF: predicated region fallthrough
CT: control target
= control target key end

     0   :  { %s625_s9 = smov 0   ;;  %s627_s10 = smov 0   ;;  %s752_s0 = inlined_call_operand.vmem [shape: f32[256,128], index: 0, kind: input, shape index: {}]   ;;  %s753_s1 = inlined_call_operand.vmem [shape: f32[128,128], index: 1, kind: input, shape index: {}]   ;;  %s754_s2 = inlined_call_operand.vmem [shape: f32[256,128], index: 2, kind: output, shape index: {}]  }
   0x1   :  { %s629_s11 = smov 0  }
   0x2 LB: > { %s31_s12 = sadd.s32 1, %s604_s10  ;;  %p507_p0 = scmp.ge.s32.totalorder %s608_s11, 1  ;;  %s608_s11 = sphi %s629_s11, %s12_s11   ;;  %s604_s10 = sphi %s627_s10, %s756_s10   ;;  %s600_s9 = sphi %s625_s9, %s755_s9  }
   0x3   : > { %p33_p1 = scmp.ge.s32.totalorder %s31_s12, 2  ;;  %p148_p2 = scmp.lt.s32.totalorder %s608_s11, 3 }
   0x5   : > { %s758_s12 = smov (%p33_p1, %s31_s12), 0  ;;  %p149_p3 = pnand %p507_p0, %p148_p2 }
   0x6   : > { %s508_s29 = sshll.u32 (!%p149_p3), %s600_s9, 4 }
   0x7   : > { %152 = sbr.rel (%p149_p3) target bundleno = 202 (0xca), region = 28  ;;  %p181_p4 = scmp.lt.s32.totalorder (!%p149_p3), %s508_s29, 31 }
   0xc   : > { %v239_v0 = vld [vmem:[%s753_s1 + $0x78] sm:$0xff]  ;;  %v238_v1 = vld [vmem:[%s753_s1 + $0x70] sm:$0xff]  ;;  %v237_v2 = vld [vmem:[%s753_s1 + $0x68] sm:$0xff]  ;;  %s760_s29 = smov (!%p181_p4, %s508_s29), 31 }
   0xd   : > { %515 = vmatpush.msra.mxu2 %v239_v0  ;;  %516 = vmatpush.msra.mxu3 %v239_v0  ;;  %v236_v3 = vld [vmem:[%s753_s1 + $0x60] sm:$0xff]  ;;  %v235_v4 = vld [vmem:[%s753_s1 + $0x58] sm:$0xff]  ;;  %v234_v5 = vld [vmem:[%s753_s1 + $0x50] sm:$0xff]  ;;  %s509_s15 = sshll.u32 %s760_s29, 3 }
   0xe   : > { %272 = vmatpush.msra.mxu0 %v239_v0  ;;  %514 = vmatpush.msra.mxu1 %v239_v0  ;;  %v233_v6 = vld [vmem:[%s753_s1 + $0x48] sm:$0xff]  ;;  %v232_v7 = vld [vmem:[%s753_s1 + $0x40] sm:$0xff]  ;;  %v231_v8 = vld [vmem:[%s753_s1 + $0x38] sm:$0xff]  ;;  %s699_s22 = scalar_lea.vmem %s752_s0, %s509_s15  ;;  %s725_s27 = scalar_lea.vmem %s754_s2, %s509_s15 }
   0xf   : > { %518 = vmatpush.msra.mxu2 %v238_v1  ;;  %519 = vmatpush.msra.mxu3 %v238_v1  ;;  %v230_v9 = vld [vmem:[%s753_s1 + $0x30] sm:$0xff]  ;;  %v229_v10 = vld [vmem:[%s753_s1 + $0x28] sm:$0xff]  ;;  %v228_v11 = vld [vmem:[%s753_s1 + $0x20] sm:$0xff] }
  0x10   : > { %273 = vmatpush.msra.mxu0 %v238_v1  ;;  %517 = vmatpush.msra.mxu1 %v238_v1  ;;  %v227_v12 = vld [vmem:[%s753_s1 + $0x18] sm:$0xff]  ;;  %v226_v13 = vld [vmem:[%s753_s1 + $0x10] sm:$0xff]  ;;  %v225_v14 = vld [vmem:[%s753_s1 + $0x8] sm:$0xff] }
  0x11   : > { %521 = vmatpush.msra.mxu2 %v237_v2  ;;  %522 = vmatpush.msra.mxu3 %v237_v2  ;;  %v224_v15 = vld [vmem:[%s753_s1] sm:$0xff]  ;;  %v265_v20 = vld [vmem:[%s699_s22 + $0x48] sm:$0xff]  ;;  %v266_v24 = vld [vmem:[%s699_s22 + $0x50] sm:$0xff] }
  0x12   : > { %274 = vmatpush.msra.mxu0 %v237_v2  ;;  %520 = vmatpush.msra.mxu1 %v237_v2  ;;  %v264_v16 = vld [vmem:[%s699_s22 + $0x40] sm:$0xff]  ;;  %v269_v21 = vld [vmem:[%s699_s22 + $0x68] sm:$0xff]  ;;  %v270_v25 = vld [vmem:[%s699_s22 + $0x70] sm:$0xff] }
  0x13   : > { %524 = vmatpush.msra.mxu2 %v236_v3  ;;  %525 = vmatpush.msra.mxu3 %v236_v3  ;;  %v268_v17 = vld [vmem:[%s699_s22 + $0x60] sm:$0xff]  ;;  %v257_v22 = vld [vmem:[%s699_s22 + $0x8] sm:$0xff]  ;;  %v258_v26 = vld [vmem:[%s699_s22 + $0x10] sm:$0xff] }
  0x14   : > { %275 = vmatpush.msra.mxu0 %v236_v3  ;;  %523 = vmatpush.msra.mxu1 %v236_v3  ;;  %v256_v18 = vld [vmem:[%s699_s22] sm:$0xff]  ;;  %v261_v23 = vld [vmem:[%s699_s22 + $0x28] sm:$0xff]  ;;  %v262_v27 = vld [vmem:[%s699_s22 + $0x30] sm:$0xff] }
  0x15   : > { %527 = vmatpush.msra.mxu2 %v235_v4  ;;  %528 = vmatpush.msra.mxu3 %v235_v4  ;;  %v260_v19 = vld [vmem:[%s699_s22 + $0x20] sm:$0xff]  ;;  %v267_v28 = vld [vmem:[%s699_s22 + $0x58] sm:$0xff] }
  0x16   : > { %276 = vmatpush.msra.mxu0 %v235_v4  ;;  %526 = vmatpush.msra.mxu1 %v235_v4  ;;  %v271_v29 = vld [vmem:[%s699_s22 + $0x78] sm:$0xff] }
  0x17   : > { %530 = vmatpush.msra.mxu2 %v234_v5  ;;  %531 = vmatpush.msra.mxu3 %v234_v5  ;;  %v259_v30 = vld [vmem:[%s699_s22 + $0x18] sm:$0xff] }
  0x18   : > { %277 = vmatpush.msra.mxu0 %v234_v5  ;;  %529 = vmatpush.msra.mxu1 %v234_v5  ;;  %v263_v31 = vld [vmem:[%s699_s22 + $0x38] sm:$0xff] }
  0x19   : > { %533 = vmatpush.msra.mxu2 %v233_v6  ;;  %534 = vmatpush.msra.mxu3 %v233_v6 }
  0x1a   : > { %278 = vmatpush.msra.mxu0 %v233_v6  ;;  %532 = vmatpush.msra.mxu1 %v233_v6 }
  0x1b   : > { %536 = vmatpush.msra.mxu2 %v232_v7  ;;  %537 = vmatpush.msra.mxu3 %v232_v7 }
  0x1c   : > { %279 = vmatpush.msra.mxu0 %v232_v7  ;;  %535 = vmatpush.msra.mxu1 %v232_v7 }
  0x1d   : > { %539 = vmatpush.msra.mxu2 %v231_v8  ;;  %540 = vmatpush.msra.mxu3 %v231_v8 }
  0x1e   : > { %280 = vmatpush.msra.mxu0 %v231_v8  ;;  %538 = vmatpush.msra.mxu1 %v231_v8 }
  0x1f   : > { %542 = vmatpush.msra.mxu2 %v230_v9  ;;  %543 = vmatpush.msra.mxu3 %v230_v9 }
  0x20   : > { %281 = vmatpush.msra.mxu0 %v230_v9  ;;  %541 = vmatpush.msra.mxu1 %v230_v9 }
  0x21   : > { %545 = vmatpush.msra.mxu2 %v229_v10  ;;  %546 = vmatpush.msra.mxu3 %v229_v10 }
  0x22   : > { %282 = vmatpush.msra.mxu0 %v229_v10  ;;  %544 = vmatpush.msra.mxu1 %v229_v10 }
  0x23   : > { %548 = vmatpush.msra.mxu2 %v228_v11  ;;  %549 = vmatpush.msra.mxu3 %v228_v11 }
  0x24   : > { %283 = vmatpush.msra.mxu0 %v228_v11  ;;  %547 = vmatpush.msra.mxu1 %v228_v11 }
  0x25   : > { %551 = vmatpush.msra.mxu2 %v227_v12  ;;  %552 = vmatpush.msra.mxu3 %v227_v12 }
  0x26   : > { %284 = vmatpush.msra.mxu0 %v227_v12  ;;  %550 = vmatpush.msra.mxu1 %v227_v12 }
  0x27   : > { %554 = vmatpush.msra.mxu2 %v226_v13  ;;  %555 = vmatpush.msra.mxu3 %v226_v13 }
  0x28   : > { %285 = vmatpush.msra.mxu0 %v226_v13  ;;  %553 = vmatpush.msra.mxu1 %v226_v13 }
  0x29   : > { %557 = vmatpush.msra.mxu2 %v225_v14  ;;  %558 = vmatpush.msra.mxu3 %v225_v14 }
  0x2a   : > { %286 = vmatpush.msra.mxu0 %v225_v14  ;;  %556 = vmatpush.msra.mxu1 %v225_v14 }
  0x2b   : > { %560 = vmatpush.msra.mxu2 %v224_v15  ;;  %561 = vmatpush.msra.mxu3 %v224_v15 }
  0x2c   : > { %312 = vmatmul.f32.vlgmr.msra.gmra.mxu2 %v264_v16  ;;  %324 = vmatmul.f32.vlgmr.msra.gmra.mxu3 %v268_v17 }
  0x2d   : > { %287 = vmatpush.msra.mxu0 %v224_v15  ;;  %559 = vmatpush.msra.mxu1 %v224_v15 }
  0x2e   : > { %288 = vmatmul.f32.vlgmr.msra.gmra.mxu0 %v256_v18  ;;  %300 = vmatmul.f32.vlgmr.msra.gmra.mxu1 %v260_v19 }
  0x34   : > { %315 = vmatmul.f32.gmra.mxu2 %v265_v20  ;;  %327 = vmatmul.f32.gmra.mxu3 %v269_v21 }
  0x36   : > { %291 = vmatmul.f32.gmra.mxu0 %v257_v22  ;;  %303 = vmatmul.f32.gmra.mxu1 %v261_v23 }
  0x3c   : > { %318 = vmatmul.f32.gmra.mxu2 %v266_v24  ;;  %330 = vmatmul.f32.gmra.mxu3 %v270_v25 }
  0x3e   : > { %294 = vmatmul.f32.gmra.mxu0 %v258_v26  ;;  %306 = vmatmul.f32.gmra.mxu1 %v262_v27 }
  0x44   : > { %321 = vmatmul.f32.gmra.mxu2 %v267_v28  ;;  %333 = vmatmul.f32.gmra.mxu3 %v271_v29 }
  0x46   : > { %297 = vmatmul.f32.gmra.mxu0 %v259_v30  ;;  %309 = vmatmul.f32.gmra.mxu1 %v263_v31 }
  0xab   : > { %v289_v32 = vpop.f32.mrf.mxu0  ;;  %v301_v33 = vpop.f32.mrf.mxu1 }
  0xac   : > { %388 = vst [vmem:[%s725_s27] sm:$0xff] %v289_v32 }
  0xad   : > { %392 = vst [vmem:[%s725_s27 + $0x20] sm:$0xff] %v301_v33 }
  0xaf   : > { %v313_v34 = vpop.f32.mrf.mxu2  ;;  %v325_v35 = vpop.f32.mrf.mxu3 }
  0xb0   : > { %396 = vst [vmem:[%s725_s27 + $0x40] sm:$0xff] %v313_v34 }
  0xb1   : > { %400 = vst [vmem:[%s725_s27 + $0x60] sm:$0xff] %v325_v35 }
  0xb3   : > { %v292_v36 = vpop.f32.mrf.mxu0  ;;  %v304_v37 = vpop.f32.mrf.mxu1 }
  0xb4   : > { %389 = vst [vmem:[%s725_s27 + $0x8] sm:$0xff] %v292_v36 }
  0xb5   : > { %393 = vst [vmem:[%s725_s27 + $0x28] sm:$0xff] %v304_v37 }
  0xb7   : > { %v316_v38 = vpop.f32.mrf.mxu2  ;;  %v328_v39 = vpop.f32.mrf.mxu3 }
  0xb8   : > { %397 = vst [vmem:[%s725_s27 + $0x48] sm:$0xff] %v316_v38 }
  0xb9   : > { %401 = vst [vmem:[%s725_s27 + $0x68] sm:$0xff] %v328_v39 }
  0xbb   : > { %v295_v40 = vpop.f32.mrf.mxu0  ;;  %v307_v41 = vpop.f32.mrf.mxu1 }
  0xbc   : > { %390 = vst [vmem:[%s725_s27 + $0x10] sm:$0xff] %v295_v40 }
  0xbd   : > { %394 = vst [vmem:[%s725_s27 + $0x30] sm:$0xff] %v307_v41 }
  0xbf   : > { %v319_v42 = vpop.f32.mrf.mxu2  ;;  %v331_v43 = vpop.f32.mrf.mxu3 }
  0xc0   : > { %398 = vst [vmem:[%s725_s27 + $0x50] sm:$0xff] %v319_v42 }
  0xc1   : > { %402 = vst [vmem:[%s725_s27 + $0x70] sm:$0xff] %v331_v43 }
  0xc3   : > { %v298_v44 = vpop.f32.mrf.mxu0  ;;  %v310_v45 = vpop.f32.mrf.mxu1 }
  0xc4   : > { %391 = vst [vmem:[%s725_s27 + $0x18] sm:$0xff] %v298_v44 }
  0xc5   : > { %395 = vst [vmem:[%s725_s27 + $0x38] sm:$0xff] %v310_v45 }
  0xc7   : > { %v322_v46 = vpop.f32.mrf.mxu2  ;;  %v334_v47 = vpop.f32.mrf.mxu3 }
  0xc8   : > { %399 = vst [vmem:[%s725_s27 + $0x58] sm:$0xff] %v322_v46 }
  0xc9   : > { %403 = vst [vmem:[%s725_s27 + $0x78] sm:$0xff] %v334_v47 }
  0xca PF: > { %s12_s11 = sadd.s32 1, %s608_s11   ;;  %s755_s9 = smov %s604_s10 }
  0xcb   : > { %p9_p5 = scmp.ge.s32.totalorder %s12_s11, 4   ;;  %s756_s10 = smov %s758_s12 }
  0xcd   :  { %11 = sbr.rel (!%p9_p5) target bundleno = 2 (0x2), region = 70 }

// kernel: rawls_gcn_graph_forward.4
= control target key start
LH: loop header
LB: loop body
LE: loop exit
PB: predicated region body
PF: predicated region fallthrough
CT: control target
= control target key end

     0   :  { %s815_s12 = smov 0   ;;  %s817_s13 = smov 0   ;;  %s1024_s0 = inlined_call_operand.vmem [shape: f32[256,256], index: 0, kind: input, shape index: {}]   ;;  %s1025_s1 = inlined_call_operand.vmem [shape: f32[256,128], index: 1, kind: input, shape index: {}]   ;;  %s1026_s2 = inlined_call_operand.vmem [shape: f32[1,128], index: 2, kind: input, shape index: {}]   ;;  %s1027_s3 = inlined_call_operand.vmem [shape: f32[256,128], index: 3, kind: output, shape index: {}]  }
   0x1   :  { %s819_s14 = smov 0  }
   0x2 LB: > { %s32_s15 = sadd.s32 1, %s789_s13  ;;  %p705_p0 = scmp.ge.s32.totalorder %s793_s14, 1  ;;  %s793_s14 = sphi %s819_s14, %s13_s14   ;;  %s789_s13 = sphi %s817_s13, %s1029_s13   ;;  %s785_s12 = sphi %s815_s12, %s1028_s12  }
   0x3   : > { %p34_p1 = scmp.ge.s32.totalorder %s32_s15, 2  ;;  %p184_p2 = scmp.lt.s32.totalorder %s793_s14, 3 }
   0x5   : > { %s1031_s15 = smov (%p34_p1, %s32_s15), 0  ;;  %p185_p3 = pnand %p705_p0, %p184_p2 }
   0x6   : > { %s706_s25 = sshll.u32 (!%p185_p3), %s785_s12, 4 }
   0x7   : > { %188 = sbr.rel (%p185_p3) target bundleno = 240 (0xf0), region = 32  ;;  %p225_p4 = scmp.lt.s32.totalorder (!%p185_p3), %s706_s25, 31 }
   0xc   : > { %v288_v0 = vld [vmem:[%s1025_s1 + $0x78] sm:$0xff]  ;;  %v287_v2 = vld [vmem:[%s1025_s1 + $0x70] sm:$0xff]  ;;  %v286_v4 = vld [vmem:[%s1025_s1 + $0x68] sm:$0xff]  ;;  %s1033_s25 = smov (!%p225_p4, %s706_s25), 31 }
   0xd   : > { %v304_v1 = vld [vmem:[%s1025_s1 + $0xf8] sm:$0xff]  ;;  %714 = vmatpush.msra.mxu2 %v288_v0  ;;  %v303_v3 = vld [vmem:[%s1025_s1 + $0xf0] sm:$0xff]  ;;  %v302_v5 = vld [vmem:[%s1025_s1 + $0xe8] sm:$0xff]  ;;  %353 = vmatpush.msra.mxu0 %v288_v0  ;;  %s713_s22 = sshll.u32 %s1033_s25, 4  ;;  %s710_s17 = sshll.u32 %s1033_s25, 3 }
   0xe   : > { %730 = vmatpush.msra.mxu3 %v304_v1  ;;  %418 = vmatpush.msra.mxu1 %v304_v1  ;;  %v285_v6 = vld [vmem:[%s1025_s1 + $0x60] sm:$0xff]  ;;  %v284_v8 = vld [vmem:[%s1025_s1 + $0x58] sm:$0xff]  ;;  %v283_v10 = vld [vmem:[%s1025_s1 + $0x50] sm:$0xff]  ;;  %s932_s6 = scalar_lea.vmem %s1024_s0, %s713_s22  ;;  %s982_s20 = scalar_lea.vmem %s1027_s3, %s710_s17 }
   0xf   : > { %715 = vmatpush.msra.mxu2 %v287_v2  ;;  %v301_v7 = vld [vmem:[%s1025_s1 + $0xe0] sm:$0xff]  ;;  %354 = vmatpush.msra.mxu0 %v287_v2  ;;  %v300_v9 = vld [vmem:[%s1025_s1 + $0xd8] sm:$0xff]  ;;  %v299_v11 = vld [vmem:[%s1025_s1 + $0xd0] sm:$0xff] }
  0x10   : > { %731 = vmatpush.msra.mxu3 %v303_v3  ;;  %419 = vmatpush.msra.mxu1 %v303_v3  ;;  %v282_v12 = vld [vmem:[%s1025_s1 + $0x48] sm:$0xff]  ;;  %v281_v14 = vld [vmem:[%s1025_s1 + $0x40] sm:$0xff]  ;;  %v280_v16 = vld [vmem:[%s1025_s1 + $0x38] sm:$0xff] }
  0x11   : > { %716 = vmatpush.msra.mxu2 %v286_v4  ;;  %355 = vmatpush.msra.mxu0 %v286_v4  ;;  %v298_v13 = vld [vmem:[%s1025_s1 + $0xc8] sm:$0xff]  ;;  %v297_v15 = vld [vmem:[%s1025_s1 + $0xc0] sm:$0xff]  ;;  %v296_v17 = vld [vmem:[%s1025_s1 + $0xb8] sm:$0xff] }
  0x12   : > { %732 = vmatpush.msra.mxu3 %v302_v5  ;;  %420 = vmatpush.msra.mxu1 %v302_v5  ;;  %v279_v18 = vld [vmem:[%s1025_s1 + $0x30] sm:$0xff]  ;;  %v278_v20 = vld [vmem:[%s1025_s1 + $0x28] sm:$0xff]  ;;  %v277_v22 = vld [vmem:[%s1025_s1 + $0x20] sm:$0xff] }
  0x13   : > { %717 = vmatpush.msra.mxu2 %v285_v6  ;;  %356 = vmatpush.msra.mxu0 %v285_v6  ;;  %v295_v19 = vld [vmem:[%s1025_s1 + $0xb0] sm:$0xff]  ;;  %v294_v21 = vld [vmem:[%s1025_s1 + $0xa8] sm:$0xff]  ;;  %v293_v23 = vld [vmem:[%s1025_s1 + $0xa0] sm:$0xff] }
  0x14   : > { %733 = vmatpush.msra.mxu3 %v301_v7  ;;  %421 = vmatpush.msra.mxu1 %v301_v7  ;;  %v276_v24 = vld [vmem:[%s1025_s1 + $0x18] sm:$0xff]  ;;  %v275_v26 = vld [vmem:[%s1025_s1 + $0x10] sm:$0xff]  ;;  %v274_v28 = vld [vmem:[%s1025_s1 + $0x8] sm:$0xff] }
  0x15   : > { %718 = vmatpush.msra.mxu2 %v284_v8  ;;  %357 = vmatpush.msra.mxu0 %v284_v8  ;;  %v292_v25 = vld [vmem:[%s1025_s1 + $0x98] sm:$0xff]  ;;  %v291_v27 = vld [vmem:[%s1025_s1 + $0x90] sm:$0xff]  ;;  %v290_v29 = vld [vmem:[%s1025_s1 + $0x88] sm:$0xff] }
  0x16   : > { %734 = vmatpush.msra.mxu3 %v300_v9  ;;  %422 = vmatpush.msra.mxu1 %v300_v9  ;;  %v273_v30 = vld [vmem:[%s1025_s1] sm:$0xff]  ;;  %v338_v33 = vld [vmem:[%s932_s6 + $0x88] sm:$0xff]  ;;  %v339_v36 = vld [vmem:[%s932_s6 + $0x90] sm:$0xff] }
  0x17   : > { %719 = vmatpush.msra.mxu2 %v283_v10  ;;  %358 = vmatpush.msra.mxu0 %v283_v10  ;;  %v289_v31 = vld [vmem:[%s1025_s1 + $0x80] sm:$0xff]  ;;  %v322_v35 = vld [vmem:[%s932_s6 + $0x8] sm:$0xff]  ;;  %v340_v37 = vld [vmem:[%s932_s6 + $0x98] sm:$0xff] }
  0x18   : > { %735 = vmatpush.msra.mxu3 %v299_v11  ;;  %423 = vmatpush.msra.mxu1 %v299_v11  ;;  %v337_v32 = vld [vmem:[%s932_s6 + $0x80] sm:$0xff]  ;;  %v323_v38 = vld [vmem:[%s932_s6 + $0x10] sm:$0xff]  ;;  %v324_v39 = vld [vmem:[%s932_s6 + $0x18] sm:$0xff] }
  0x19   : > { %720 = vmatpush.msra.mxu2 %v282_v12  ;;  %359 = vmatpush.msra.mxu0 %v282_v12  ;;  %v321_v34 = vld [vmem:[%s932_s6] sm:$0xff]  ;;  %v342_v41 = vld [vmem:[%s932_s6 + $0xa8] sm:$0xff]  ;;  %v343_v44 = vld [vmem:[%s932_s6 + $0xb0] sm:$0xff] }
  0x1a   : > { %736 = vmatpush.msra.mxu3 %v298_v13  ;;  %424 = vmatpush.msra.mxu1 %v298_v13  ;;  %v341_v40 = vld [vmem:[%s932_s6 + $0xa0] sm:$0xff]  ;;  %v326_v43 = vld [vmem:[%s932_s6 + $0x28] sm:$0xff]  ;;  %v344_v45 = vld [vmem:[%s932_s6 + $0xb8] sm:$0xff] }
  0x1b   : > { %721 = vmatpush.msra.mxu2 %v281_v14  ;;  %360 = vmatpush.msra.mxu0 %v281_v14  ;;  %v325_v42 = vld [vmem:[%s932_s6 + $0x20] sm:$0xff]  ;;  %v327_v46 = vld [vmem:[%s932_s6 + $0x30] sm:$0xff]  ;;  %v328_v47 = vld [vmem:[%s932_s6 + $0x38] sm:$0xff] }
  0x1c   : > { %737 = vmatpush.msra.mxu3 %v297_v15  ;;  %425 = vmatpush.msra.mxu1 %v297_v15  ;;  %v345_v48 = vld [vmem:[%s932_s6 + $0xc0] sm:$0xff]  ;;  %v346_v49 = vld [vmem:[%s932_s6 + $0xc8] sm:$0xff]  ;;  %v347_v52 = vld [vmem:[%s932_s6 + $0xd0] sm:$0xff] }
  0x1d   : > { %722 = vmatpush.msra.mxu2 %v280_v16  ;;  %361 = vmatpush.msra.mxu0 %v280_v16  ;;  %v329_v50 = vld [vmem:[%s932_s6 + $0x40] sm:$0xff]  ;;  %v330_v51 = vld [vmem:[%s932_s6 + $0x48] sm:$0xff]  ;;  %v348_v53 = vld [vmem:[%s932_s6 + $0xd8] sm:$0xff] }
  0x1e   : > { %738 = vmatpush.msra.mxu3 %v296_v17  ;;  %426 = vmatpush.msra.mxu1 %v296_v17  ;;  %v331_v54 = vld [vmem:[%s932_s6 + $0x50] sm:$0xff]  ;;  %v332_v55 = vld [vmem:[%s932_s6 + $0x58] sm:$0xff]  ;;  %v349_v56 = vld [vmem:[%s932_s6 + $0xe0] sm:$0xff] }
  0x1f   : > { %723 = vmatpush.msra.mxu2 %v279_v18  ;;  %362 = vmatpush.msra.mxu0 %v279_v18  ;;  %v350_v57 = vld [vmem:[%s932_s6 + $0xe8] sm:$0xff]  ;;  %v333_v58 = vld [vmem:[%s932_s6 + $0x60] sm:$0xff]  ;;  %v351_v60 = vld [vmem:[%s932_s6 + $0xf0] sm:$0xff] }
  0x20   : > { %739 = vmatpush.msra.mxu3 %v295_v19  ;;  %427 = vmatpush.msra.mxu1 %v295_v19  ;;  %v334_v59 = vld [vmem:[%s932_s6 + $0x68] sm:$0xff]  ;;  %v352_v61 = vld [vmem:[%s932_s6 + $0xf8] sm:$0xff]  ;;  %v335_v62 = vld [vmem:[%s932_s6 + $0x70] sm:$0xff] }
  0x21   : > { %724 = vmatpush.msra.mxu2 %v278_v20  ;;  %363 = vmatpush.msra.mxu0 %v278_v20  ;;  %v336_v63 = vld [vmem:[%s932_s6 + $0x78] sm:$0xff]  ;;  %v975_v0 = vld [vmem:[%s1026_s2] ss:$0 sm:$0xff] }
  0x22   : > { %740 = vmatpush.msra.mxu3 %v294_v21  ;;  %428 = vmatpush.msra.mxu1 %v294_v21 }
  0x23   : > { %725 = vmatpush.msra.mxu2 %v277_v22  ;;  %364 = vmatpush.msra.mxu0 %v277_v22 }
  0x24   : > { %741 = vmatpush.msra.mxu3 %v293_v23  ;;  %429 = vmatpush.msra.mxu1 %v293_v23 }
  0x25   : > { %726 = vmatpush.msra.mxu2 %v276_v24  ;;  %365 = vmatpush.msra.mxu0 %v276_v24 }
  0x26   : > { %742 = vmatpush.msra.mxu3 %v292_v25  ;;  %430 = vmatpush.msra.mxu1 %v292_v25 }
  0x27   : > { %727 = vmatpush.msra.mxu2 %v275_v26  ;;  %366 = vmatpush.msra.mxu0 %v275_v26 }
  0x28   : > { %743 = vmatpush.msra.mxu3 %v291_v27  ;;  %431 = vmatpush.msra.mxu1 %v291_v27 }
  0x29   : > { %728 = vmatpush.msra.mxu2 %v274_v28  ;;  %367 = vmatpush.msra.mxu0 %v274_v28 }
  0x2a   : > { %744 = vmatpush.msra.mxu3 %v290_v29  ;;  %432 = vmatpush.msra.mxu1 %v290_v29 }
  0x2b   : > { %729 = vmatpush.msra.mxu2 %v273_v30  ;;  %368 = vmatpush.msra.mxu0 %v273_v30 }
  0x2c   : > { %745 = vmatpush.msra.mxu3 %v289_v31  ;;  %393 = vmatmul.f32.vlgmr.msra.gmra.mxu2 %v337_v32 }
  0x2d   : > { %458 = vmatmul.f32.vlgmr.msra.gmra.mxu3 %v338_v33  ;;  %433 = vmatpush.msra.mxu1 %v289_v31 }
  0x2e   : > { %369 = vmatmul.f32.vlgmr.msra.gmra.mxu0 %v321_v34  ;;  %434 = vmatmul.f32.vlgmr.msra.gmra.mxu1 %v322_v35 }
  0x34   : > { %396 = vmatmul.f32.gmra.mxu2 %v339_v36 }
  0x35   : > { %461 = vmatmul.f32.gmra.mxu3 %v340_v37 }
  0x36   : > { %372 = vmatmul.f32.gmra.mxu0 %v323_v38  ;;  %437 = vmatmul.f32.gmra.mxu1 %v324_v39 }
  0x3c   : > { %399 = vmatmul.f32.gmra.mxu2 %v341_v40 }
  0x3d   : > { %464 = vmatmul.f32.gmra.mxu3 %v342_v41 }
  0x3e   : > { %375 = vmatmul.f32.gmra.mxu0 %v325_v42  ;;  %440 = vmatmul.f32.gmra.mxu1 %v326_v43 }
  0x44   : > { %402 = vmatmul.f32.gmra.mxu2 %v343_v44 }
  0x45   : > { %467 = vmatmul.f32.gmra.mxu3 %v344_v45 }
  0x46   : > { %378 = vmatmul.f32.gmra.mxu0 %v327_v46  ;;  %443 = vmatmul.f32.gmra.mxu1 %v328_v47 }
  0x4c   : > { %405 = vmatmul.f32.gmra.mxu2 %v345_v48 }
  0x4d   : > { %470 = vmatmul.f32.gmra.mxu3 %v346_v49 }
  0x4e   : > { %381 = vmatmul.f32.gmra.mxu0 %v329_v50  ;;  %446 = vmatmul.f32.gmra.mxu1 %v330_v51 }
  0x54   : > { %408 = vmatmul.f32.gmra.mxu2 %v347_v52 }
  0x55   : > { %473 = vmatmul.f32.gmra.mxu3 %v348_v53 }
  0x56   : > { %384 = vmatmul.f32.gmra.mxu0 %v331_v54  ;;  %449 = vmatmul.f32.gmra.mxu1 %v332_v55 }
  0x5c   : > { %411 = vmatmul.f32.gmra.mxu2 %v349_v56 }
  0x5d   : > { %476 = vmatmul.f32.gmra.mxu3 %v350_v57 }
  0x5e   : > { %387 = vmatmul.f32.gmra.mxu0 %v333_v58  ;;  %452 = vmatmul.f32.gmra.mxu1 %v334_v59 }
  0x64   : > { %414 = vmatmul.f32.gmra.mxu2 %v351_v60 }
  0x65   : > { %479 = vmatmul.f32.gmra.mxu3 %v352_v61 }
  0x66   : > { %390 = vmatmul.f32.gmra.mxu0 %v335_v62  ;;  %455 = vmatmul.f32.gmra.mxu1 %v336_v63 }
  0xab   : > { %v370_v1 = vpop.f32.mrf.mxu0  ;;  %v435_v2 = vpop.f32.mrf.mxu1 }
  0xac   : > { %v436_v3 = vadd.f32 %v435_v2, %v370_v1 }
  0xae   : > { %v538_v4 = vadd.f32 %v975_v0, %v436_v3 }
  0xaf   : > { %v394_v5 = vpop.f32.mrf.mxu2 }
  0xb0   : > { %v459_v6 = vpop.f32.mrf.mxu3  ;;  %v554_v7 = vmax.f32 %v538_v4, 0.0 }
  0xb1   : > { %v460_v8 = vadd.f32 %v459_v6, %v394_v5 }
  0xb2   : > { %570 = vst [vmem:[%s982_s20] sm:$0xff] %v554_v7 }
  0xb3   : > { %v546_v9 = vadd.f32 %v975_v0, %v460_v8  ;;  %v373_v10 = vpop.f32.mrf.mxu0  ;;  %v438_v11 = vpop.f32.mrf.mxu1 }
  0xb4   : > { %v439_v13 = vadd.f32 %v438_v11, %v373_v10 }
  0xb5   : > { %v562_v12 = vmax.f32 %v546_v9, 0.0 }
  0xb6   : > { %v539_v14 = vadd.f32 %v975_v0, %v439_v13 }
  0xb7   : > { %578 = vst [vmem:[%s982_s20 + $0x40] sm:$0xff] %v562_v12  ;;  %v397_v15 = vpop.f32.mrf.mxu2 }
  0xb8   : > { %v462_v16 = vpop.f32.mrf.mxu3  ;;  %v555_v17 = vmax.f32 %v539_v14, 0.0 }
  0xb9   : > { %v463_v18 = vadd.f32 %v462_v16, %v397_v15 }
  0xba   : > { %571 = vst [vmem:[%s982_s20 + $0x8] sm:$0xff] %v555_v17 }
  0xbb   : > { %v547_v19 = vadd.f32 %v975_v0, %v463_v18  ;;  %v376_v20 = vpop.f32.mrf.mxu0  ;;  %v441_v21 = vpop.f32.mrf.mxu1 }
  0xbc   : > { %v442_v23 = vadd.f32 %v441_v21, %v376_v20 }
  0xbd   : > { %v563_v22 = vmax.f32 %v547_v19, 0.0 }
  0xbe   : > { %v540_v24 = vadd.f32 %v975_v0, %v442_v23 }
  0xbf   : > { %579 = vst [vmem:[%s982_s20 + $0x48] sm:$0xff] %v563_v22  ;;  %v400_v25 = vpop.f32.mrf.mxu2 }
  0xc0   : > { %v465_v26 = vpop.f32.mrf.mxu3  ;;  %v556_v27 = vmax.f32 %v540_v24, 0.0 }
  0xc1   : > { %v466_v28 = vadd.f32 %v465_v26, %v400_v25 }
  0xc2   : > { %572 = vst [vmem:[%s982_s20 + $0x10] sm:$0xff] %v556_v27 }
  0xc3   : > { %v548_v29 = vadd.f32 %v975_v0, %v466_v28  ;;  %v379_v30 = vpop.f32.mrf.mxu0  ;;  %v444_v31 = vpop.f32.mrf.mxu1 }
  0xc4   : > { %v445_v33 = vadd.f32 %v444_v31, %v379_v30 }
  0xc5   : > { %v564_v32 = vmax.f32 %v548_v29, 0.0 }
  0xc6   : > { %v541_v34 = vadd.f32 %v975_v0, %v445_v33 }
  0xc7   : > { %580 = vst [vmem:[%s982_s20 + $0x50] sm:$0xff] %v564_v32  ;;  %v403_v35 = vpop.f32.mrf.mxu2 }
  0xc8   : > { %v468_v36 = vpop.f32.mrf.mxu3  ;;  %v557_v37 = vmax.f32 %v541_v34, 0.0 }
  0xc9   : > { %v469_v38 = vadd.f32 %v468_v36, %v403_v35 }
  0xca   : > { %573 = vst [vmem:[%s982_s20 + $0x18] sm:$0xff] %v557_v37 }
  0xcb   : > { %v549_v39 = vadd.f32 %v975_v0, %v469_v38  ;;  %v382_v40 = vpop.f32.mrf.mxu0  ;;  %v447_v41 = vpop.f32.mrf.mxu1 }
  0xcc   : > { %v448_v43 = vadd.f32 %v447_v41, %v382_v40 }
  0xcd   : > { %v565_v42 = vmax.f32 %v549_v39, 0.0 }
  0xce   : > { %v542_v44 = vadd.f32 %v975_v0, %v448_v43 }
  0xcf   : > { %581 = vst [vmem:[%s982_s20 + $0x58] sm:$0xff] %v565_v42  ;;  %v406_v45 = vpop.f32.mrf.mxu2 }
  0xd0   : > { %v471_v46 = vpop.f32.mrf.mxu3  ;;  %v558_v47 = vmax.f32 %v542_v44, 0.0 }
  0xd1   : > { %v472_v48 = vadd.f32 %v471_v46, %v406_v45 }
  0xd2   : > { %574 = vst [vmem:[%s982_s20 + $0x20] sm:$0xff] %v558_v47 }
  0xd3   : > { %v550_v49 = vadd.f32 %v975_v0, %v472_v48  ;;  %v385_v50 = vpop.f32.mrf.mxu0  ;;  %v450_v51 = vpop.f32.mrf.mxu1 }
  0xd4   : > { %v451_v53 = vadd.f32 %v450_v51, %v385_v50 }
  0xd5   : > { %v566_v52 = vmax.f32 %v550_v49, 0.0 }
  0xd6   : > { %v543_v54 = vadd.f32 %v975_v0, %v451_v53 }
  0xd7   : > { %582 = vst [vmem:[%s982_s20 + $0x60] sm:$0xff] %v566_v52  ;;  %v409_v55 = vpop.f32.mrf.mxu2 }
  0xd8   : > { %v474_v56 = vpop.f32.mrf.mxu3  ;;  %v559_v57 = vmax.f32 %v543_v54, 0.0 }
  0xd9   : > { %v475_v58 = vadd.f32 %v474_v56, %v409_v55 }
  0xda   : > { %575 = vst [vmem:[%s982_s20 + $0x28] sm:$0xff] %v559_v57 }
  0xdb   : > { %v551_v59 = vadd.f32 %v975_v0, %v475_v58  ;;  %v388_v60 = vpop.f32.mrf.mxu0  ;;  %v453_v61 = vpop.f32.mrf.mxu1 }
  0xdc   : > { %v454_v63 = vadd.f32 %v453_v61, %v388_v60 }
  0xdd   : > { %v567_v62 = vmax.f32 %v551_v59, 0.0 }
  0xde   : > { %v544_v1 = vadd.f32 %v975_v0, %v454_v63 }
  0xdf   : > { %583 = vst [vmem:[%s982_s20 + $0x68] sm:$0xff] %v567_v62  ;;  %v412_v2 = vpop.f32.mrf.mxu2 }
  0xe0   : > { %v477_v3 = vpop.f32.mrf.mxu3  ;;  %v560_v4 = vmax.f32 %v544_v1, 0.0 }
  0xe1   : > { %v478_v5 = vadd.f32 %v477_v3, %v412_v2 }
  0xe2   : > { %576 = vst [vmem:[%s982_s20 + $0x30] sm:$0xff] %v560_v4 }
  0xe3   : > { %v552_v6 = vadd.f32 %v975_v0, %v478_v5  ;;  %v391_v7 = vpop.f32.mrf.mxu0  ;;  %v456_v8 = vpop.f32.mrf.mxu1 }
  0xe4   : > { %v457_v10 = vadd.f32 %v456_v8, %v391_v7 }
  0xe5   : > { %v568_v9 = vmax.f32 %v552_v6, 0.0 }
  0xe6   : > { %v545_v11 = vadd.f32 %v975_v0, %v457_v10 }
  0xe7   : > { %584 = vst [vmem:[%s982_s20 + $0x70] sm:$0xff] %v568_v9  ;;  %v415_v12 = vpop.f32.mrf.mxu2 }
  0xe8   : > { %v480_v13 = vpop.f32.mrf.mxu3  ;;  %v561_v14 = vmax.f32 %v545_v11, 0.0 }
  0xe9   : > { %v481_v15 = vadd.f32 %v480_v13, %v415_v12 }
  0xea   : > { %577 = vst [vmem:[%s982_s20 + $0x38] sm:$0xff] %v561_v14 }
  0xeb   : > { %v553_v16 = vadd.f32 %v975_v0, %v481_v15 }
  0xed   : > { %v569_v17 = vmax.f32 %v553_v16, 0.0 }
  0xef   : > { %585 = vst [vmem:[%s982_s20 + $0x78] sm:$0xff] %v569_v17 }
  0xf0 PF: > { %s13_s14 = sadd.s32 1, %s793_s14   ;;  %s1028_s12 = smov %s789_s13 }
  0xf1   : > { %p10_p5 = scmp.ge.s32.totalorder %s13_s14, 4   ;;  %s1029_s13 = smov %s1031_s15 }
  0xf3   :  { %12 = sbr.rel (!%p10_p5) target bundleno = 2 (0x2), region = 77 }

// kernel: rawls_gcn_graph_forward.5
= control target key start
LH: loop header
LB: loop body
LE: loop exit
PB: predicated region body
PF: predicated region fallthrough
CT: control target
= control target key end

     0   :  { %s1048_s15 = smov 0   ;;  %s1050_s16 = smov 0   ;;  %s1427_s0 = inlined_call_operand.vmem [shape: f32[256,256], index: 0, kind: input, shape index: {}]   ;;  %s1428_s1 = inlined_call_operand.vmem [shape: f32[256,128], index: 1, kind: input, shape index: {}]   ;;  %s1429_s2 = inlined_call_operand.vmem [shape: f32[128,128], index: 2, kind: input, shape index: {}]   ;;  %s1430_s3 = inlined_call_operand.vmem [shape: f32[1,128], index: 3, kind: input, shape index: {}]   ;;  %s1431_s4 = inlined_call_operand.vmem [shape: f32[256,128], index: 4, kind: output, shape index: {}]  }
   0x1   :  { %s1052_s17 = smov 0  }
   0x2 LB: > { %s26_s18 = sadd.s32 1, %s1017_s16  ;;  %p853_p0 = scmp.ge.s32.totalorder %s1021_s17, 1  ;;  %s1021_s17 = sphi %s1052_s17, %s14_s17   ;;  %s1017_s16 = sphi %s1050_s16, %s1433_s16   ;;  %s1013_s15 = sphi %s1048_s15, %s1432_s15  }
   0x3   : > { %p28_p1 = scmp.ge.s32.totalorder %s26_s18, 2  ;;  %p183_p2 = scmp.lt.s32.totalorder %s1021_s17, 3 }
   0x5   : > { %s1435_s18 = smov (%p28_p1, %s26_s18), 0  ;;  %p184_p3 = pnand %p853_p0, %p183_p2 }
   0x6   : > { %s854_s27 = sshll.u32 (!%p184_p3), %s1013_s15, 4 }
   0x7   : > { %187 = sbr.rel (%p184_p3) target bundleno = 659 (0x293), region = 36  ;;  %p216_p4 = scmp.lt.s32.totalorder (!%p184_p3), %s854_s27, 31 }
   0xc   : > { %v269_v0 = vld [vmem:[%s1428_s1 + $0x78] sm:$0xff]  ;;  %v268_v2 = vld [vmem:[%s1428_s1 + $0x70] sm:$0xff]  ;;  %v267_v4 = vld [vmem:[%s1428_s1 + $0x68] sm:$0xff]  ;;  %s1437_s27 = smov (!%p216_p4, %s854_s27), 31 }
   0xd   : > { %v1074_v1 = vld [vmem:[%s1428_s1 + $0xf8] sm:$0xff]  ;;  %334 = vmatpush.msra.mxu0 %v269_v0  ;;  %862 = vmatpush.msra.mxu3 %v269_v0  ;;  %v1082_v3 = vld [vmem:[%s1428_s1 + $0xf0] sm:$0xff]  ;;  %v1091_v5 = vld [vmem:[%s1428_s1 + $0xe8] sm:$0xff]  ;;  %s861_s28 = sshll.u32 %s1437_s27, 4  ;;  %s858_s15 = sshll.u32 %s1437_s27, 3 }
   0xe   : > { %399 = vmatpush.msra.mxu1 %v1074_v1  ;;  %v266_v6 = vld [vmem:[%s1428_s1 + $0x60] sm:$0xff]  ;;  %v265_v8 = vld [vmem:[%s1428_s1 + $0x58] sm:$0xff]  ;;  %v264_v10 = vld [vmem:[%s1428_s1 + $0x50] sm:$0xff]  ;;  %s1192_s10 = scalar_lea.vmem %s1427_s0, %s861_s28  ;;  %s1384_s11 = scalar_lea.vmem %s1431_s4, %s858_s15 }
   0xf   : > { %335 = vmatpush.msra.mxu0 %v268_v2  ;;  %863 = vmatpush.msra.mxu3 %v268_v2  ;;  %v1100_v7 = vld [vmem:[%s1428_s1 + $0xe0] sm:$0xff]  ;;  %v1109_v9 = vld [vmem:[%s1428_s1 + $0xd8] sm:$0xff]  ;;  %v1118_v11 = vld [vmem:[%s1428_s1 + $0xd0] sm:$0xff] }
  0x10   : > { %400 = vmatpush.msra.mxu1 %v1082_v3  ;;  %v263_v12 = vld [vmem:[%s1428_s1 + $0x48] sm:$0xff]  ;;  %v262_v14 = vld [vmem:[%s1428_s1 + $0x40] sm:$0xff]  ;;  %v261_v16 = vld [vmem:[%s1428_s1 + $0x38] sm:$0xff] }
  0x11   : > { %336 = vmatpush.msra.mxu0 %v267_v4  ;;  %864 = vmatpush.msra.mxu3 %v267_v4  ;;  %v1127_v13 = vld [vmem:[%s1428_s1 + $0xc8] sm:$0xff]  ;;  %v1137_v15 = vld [vmem:[%s1428_s1 + $0xc0] sm:$0xff]  ;;  %v1146_v17 = vld [vmem:[%s1428_s1 + $0xb8] sm:$0xff] }
  0x12   : > { %401 = vmatpush.msra.mxu1 %v1091_v5  ;;  %v260_v18 = vld [vmem:[%s1428_s1 + $0x30] sm:$0xff]  ;;  %v259_v20 = vld [vmem:[%s1428_s1 + $0x28] sm:$0xff]  ;;  %v258_v22 = vld [vmem:[%s1428_s1 + $0x20] sm:$0xff] }
  0x13   : > { %337 = vmatpush.msra.mxu0 %v266_v6  ;;  %865 = vmatpush.msra.mxu3 %v266_v6  ;;  %v1155_v19 = vld [vmem:[%s1428_s1 + $0xb0] sm:$0xff]  ;;  %v275_v21 = vld [vmem:[%s1428_s1 + $0xa8] sm:$0xff]  ;;  %v274_v23 = vld [vmem:[%s1428_s1 + $0xa0] sm:$0xff] }
  0x14   : > { %402 = vmatpush.msra.mxu1 %v1100_v7  ;;  %v257_v24 = vld [vmem:[%s1428_s1 + $0x18] sm:$0xff]  ;;  %v256_v26 = vld [vmem:[%s1428_s1 + $0x10] sm:$0xff]  ;;  %v255_v28 = vld [vmem:[%s1428_s1 + $0x8] sm:$0xff] }
  0x15   : > { %338 = vmatpush.msra.mxu0 %v265_v8  ;;  %866 = vmatpush.msra.mxu3 %v265_v8  ;;  %v273_v25 = vld [vmem:[%s1428_s1 + $0x98] sm:$0xff]  ;;  %v272_v27 = vld [vmem:[%s1428_s1 + $0x90] sm:$0xff]  ;;  %v271_v29 = vld [vmem:[%s1428_s1 + $0x88] sm:$0xff] }
  0x16   : > { %403 = vmatpush.msra.mxu1 %v1109_v9  ;;  %v254_v30 = vld [vmem:[%s1428_s1] sm:$0xff]  ;;  %v303_v34 = vld [vmem:[%s1192_s10 + $0x8] sm:$0xff]  ;;  %v304_v35 = vld [vmem:[%s1192_s10 + $0x10] sm:$0xff] }
  0x17   : > { %339 = vmatpush.msra.mxu0 %v264_v10  ;;  %867 = vmatpush.msra.mxu3 %v264_v10  ;;  %v270_v31 = vld [vmem:[%s1428_s1 + $0x80] sm:$0xff]  ;;  %v328_v36 = vld [vmem:[%s1192_s10 + $0xd0] sm:$0xff]  ;;  %v305_v37 = vld [vmem:[%s1192_s10 + $0x18] sm:$0xff] }
  0x18   : > { %404 = vmatpush.msra.mxu1 %v1118_v11  ;;  %v302_v32 = vld [vmem:[%s1192_s10] sm:$0xff]  ;;  %v307_v40 = vld [vmem:[%s1192_s10 + $0x28] sm:$0xff]  ;;  %v308_v41 = vld [vmem:[%s1192_s10 + $0x30] sm:$0xff] }
  0x19   : > { %340 = vmatpush.msra.mxu0 %v263_v12  ;;  %868 = vmatpush.msra.mxu3 %v263_v12  ;;  %v326_v33 = vld [vmem:[%s1192_s10 + $0xc0] sm:$0xff]  ;;  %v332_v42 = vld [vmem:[%s1192_s10 + $0xf0] sm:$0xff]  ;;  %v309_v43 = vld [vmem:[%s1192_s10 + $0x38] sm:$0xff] }
  0x1a   : > { %405 = vmatpush.msra.mxu1 %v1127_v13  ;;  %v306_v38 = vld [vmem:[%s1192_s10 + $0x20] sm:$0xff]  ;;  %v311_v45 = vld [vmem:[%s1192_s10 + $0x48] sm:$0xff]  ;;  %v312_v47 = vld [vmem:[%s1192_s10 + $0x50] sm:$0xff] }
  0x1b   : > { %341 = vmatpush.msra.mxu0 %v262_v14  ;;  %869 = vmatpush.msra.mxu3 %v262_v14  ;;  %v330_v39 = vld [vmem:[%s1192_s10 + $0xe0] sm:$0xff]  ;;  %v327_v46 = vld [vmem:[%s1192_s10 + $0xc8] sm:$0xff]  ;;  %v313_v48 = vld [vmem:[%s1192_s10 + $0x58] sm:$0xff] }
  0x1c   : > { %406 = vmatpush.msra.mxu1 %v1137_v15  ;;  %v310_v44 = vld [vmem:[%s1192_s10 + $0x40] sm:$0xff]  ;;  %v329_v49 = vld [vmem:[%s1192_s10 + $0xd8] sm:$0xff]  ;;  %v315_v51 = vld [vmem:[%s1192_s10 + $0x68] sm:$0xff] }
  0x1d   : > { %342 = vmatpush.msra.mxu0 %v261_v16  ;;  %870 = vmatpush.msra.mxu3 %v261_v16  ;;  %v314_v50 = vld [vmem:[%s1192_s10 + $0x60] sm:$0xff]  ;;  %v331_v52 = vld [vmem:[%s1192_s10 + $0xe8] sm:$0xff]  ;;  %v316_v53 = vld [vmem:[%s1192_s10 + $0x70] sm:$0xff] }
  0x1e   : > { %407 = vmatpush.msra.mxu1 %v1146_v17  ;;  %v317_v54 = vld [vmem:[%s1192_s10 + $0x78] sm:$0xff]  ;;  %v529_v57 = vld [vmem:[%s1429_s2 + $0x70] sm:$0xff]  ;;  %v528_v58 = vld [vmem:[%s1429_s2 + $0x68] sm:$0xff] }
  0x1f   : > { %343 = vmatpush.msra.mxu0 %v260_v18  ;;  %871 = vmatpush.msra.mxu3 %v260_v18  ;;  %v333_v55 = vld [vmem:[%s1192_s10 + $0xf8] sm:$0xff]  ;;  %v318_v59 = vld [vmem:[%s1192_s10 + $0x80] sm:$0xff]  ;;  %v319_v61 = vld [vmem:[%s1192_s10 + $0x88] sm:$0xff] }
  0x20   : > { %408 = vmatpush.msra.mxu1 %v1155_v19  ;;  %v530_v56 = vld [vmem:[%s1429_s2 + $0x78] sm:$0xff]  ;;  %v527_v60 = vld [vmem:[%s1429_s2 + $0x60] sm:$0xff]  ;;  %v525_v63 = vld [vmem:[%s1429_s2 + $0x50] sm:$0xff] }
  0x21   : > { %344 = vmatpush.msra.mxu0 %v259_v20  ;;  %872 = vmatpush.msra.mxu3 %v259_v20  ;;  %v526_v62 = vld [vmem:[%s1429_s2 + $0x58] sm:$0xff]  ;;  %v524_v0 = vld [vmem:[%s1429_s2 + $0x48] sm:$0xff]  ;;  %v523_v2 = vld [vmem:[%s1429_s2 + $0x40] sm:$0xff] }
  0x22   : > { %409 = vmatpush.msra.mxu1 %v275_v21  ;;  %535 = vmatpush.msra.mxu2 %v530_v56  ;;  %v522_v4 = vld [vmem:[%s1429_s2 + $0x38] sm:$0xff]  ;;  %v520_v6 = vld [vmem:[%s1429_s2 + $0x28] sm:$0xff]  ;;  %v519_v8 = vld [vmem:[%s1429_s2 + $0x20] sm:$0xff] }
  0x23   : > { %345 = vmatpush.msra.mxu0 %v258_v22  ;;  %873 = vmatpush.msra.mxu3 %v258_v22  ;;  %v518_v10 = vld [vmem:[%s1429_s2 + $0x18] sm:$0xff]  ;;  %v324_v12 = vld [vmem:[%s1192_s10 + $0xb0] sm:$0xff]  ;;  %v516_v14 = vld [vmem:[%s1429_s2 + $0x8] sm:$0xff] }
  0x24   : > { %410 = vmatpush.msra.mxu1 %v274_v23  ;;  %536 = vmatpush.msra.mxu2 %v529_v57 }
  0x25   : > { %346 = vmatpush.msra.mxu0 %v257_v24  ;;  %874 = vmatpush.msra.mxu3 %v257_v24 }
  0x26   : > { %411 = vmatpush.msra.mxu1 %v273_v25  ;;  %537 = vmatpush.msra.mxu2 %v528_v58 }
  0x27   : > { %347 = vmatpush.msra.mxu0 %v256_v26  ;;  %875 = vmatpush.msra.mxu3 %v256_v26 }
  0x28   : > { %412 = vmatpush.msra.mxu1 %v272_v27  ;;  %538 = vmatpush.msra.mxu2 %v527_v60 }
  0x29   : > { %348 = vmatpush.msra.mxu0 %v255_v28  ;;  %876 = vmatpush.msra.mxu3 %v255_v28 }
  0x2a   : > { %413 = vmatpush.msra.mxu1 %v271_v29  ;;  %539 = vmatpush.msra.mxu2 %v526_v62 }
  0x2b   : > { %349 = vmatpush.msra.mxu0 %v254_v30  ;;  %877 = vmatpush.msra.mxu3 %v254_v30 }
  0x2c   : > { %414 = vmatpush.msra.mxu1 %v270_v31  ;;  %350 = vmatmul.f32.vlgmr.msra.gmra.mxu0 %v302_v32 }
  0x2d   : > { %386 = vmatmul.f32.vlgmr.msra.gmra.mxu3 %v326_v33  ;;  %415 = vmatmul.f32.vlgmr.msra.gmra.mxu1 %v303_v34 }
  0x2e   : > { %878 = vmatpush.msrb.mxu3 %v1074_v1  ;;  %540 = vmatpush.msra.mxu2 %v525_v63  ;;  %v320_v1 = vld [vmem:[%s1192_s10 + $0x90] sm:$0xff] }
  0x30   : > { %879 = vmatpush.msrb.mxu3 %v1082_v3  ;;  %v321_v3 = vld [vmem:[%s1192_s10 + $0x98] sm:$0xff]  ;;  %541 = vmatpush.msra.mxu2 %v524_v0 }
  0x32   : > { %880 = vmatpush.msrb.mxu3 %v1091_v5  ;;  %542 = vmatpush.msra.mxu2 %v523_v2  ;;  %v521_v5 = vld [vmem:[%s1429_s2 + $0x30] sm:$0xff] }
  0x34   : > { %881 = vmatpush.msrb.mxu3 %v1100_v7  ;;  %353 = vmatmul.f32.gmra.mxu0 %v304_v35  ;;  %v322_v7 = vld [vmem:[%s1192_s10 + $0xa0] sm:$0xff] }
  0x35   : > { %389 = vmatmul.f32.gmra.mxu3 %v328_v36  ;;  %418 = vmatmul.f32.gmra.mxu1 %v305_v37 }
  0x36   : > { %882 = vmatpush.msrb.mxu3 %v1109_v9  ;;  %543 = vmatpush.msra.mxu2 %v522_v4  ;;  %v323_v9 = vld [vmem:[%s1192_s10 + $0xa8] sm:$0xff] }
  0x38   : > { %883 = vmatpush.msrb.mxu3 %v1118_v11  ;;  %544 = vmatpush.msra.mxu2 %v521_v5  ;;  %v517_v11 = vld [vmem:[%s1429_s2 + $0x10] sm:$0xff] }
  0x3a   : > { %884 = vmatpush.msrb.mxu3 %v1127_v13  ;;  %545 = vmatpush.msra.mxu2 %v520_v6  ;;  %v325_v13 = vld [vmem:[%s1192_s10 + $0xb8] sm:$0xff] }
  0x3c   : > { %885 = vmatpush.msrb.mxu3 %v1137_v15  ;;  %356 = vmatmul.f32.gmra.mxu0 %v306_v38  ;;  %v515_v15 = vld [vmem:[%s1429_s2] sm:$0xff] }
  0x3d   : > { %392 = vmatmul.f32.gmra.mxu3 %v330_v39  ;;  %421 = vmatmul.f32.gmra.mxu1 %v307_v40 }
  0x3e   : > { %886 = vmatpush.msrb.mxu3 %v1146_v17  ;;  %546 = vmatpush.msra.mxu2 %v519_v8 }
  0x40   : > { %887 = vmatpush.msrb.mxu3 %v1155_v19  ;;  %547 = vmatpush.msra.mxu2 %v518_v10 }
  0x42   : > { %888 = vmatpush.msrb.mxu3 %v275_v21  ;;  %548 = vmatpush.msra.mxu2 %v517_v11 }
  0x44   : > { %889 = vmatpush.msrb.mxu3 %v274_v23  ;;  %359 = vmatmul.f32.gmra.mxu0 %v308_v41 }
  0x45   : > { %395 = vmatmul.f32.gmra.mxu3 %v332_v42  ;;  %424 = vmatmul.f32.gmra.mxu1 %v309_v43 }
  0x46   : > { %890 = vmatpush.msrb.mxu3 %v273_v25  ;;  %549 = vmatpush.msra.mxu2 %v516_v14 }
  0x48   : > { %891 = vmatpush.msrb.mxu3 %v272_v27  ;;  %550 = vmatpush.msra.mxu2 %v515_v15 }
  0x4a   : > { %892 = vmatpush.msrb.mxu3 %v271_v29 }
  0x4c   : > { %893 = vmatpush.msrb.mxu3 %v270_v31  ;;  %362 = vmatmul.f32.gmra.mxu0 %v310_v44 }
  0x4d   : > { %427 = vmatmul.f32.gmra.mxu1 %v311_v45  ;;  %451 = vmatmul.f32.vlgmr.msrb.gmra.mxu3 %v327_v46 }
  0x4e   : > { %894 = vmatpush.msra.mxu3 %v530_v56 }
  0x50   : > { %895 = vmatpush.msra.mxu3 %v529_v57 }
  0x52   : > { %896 = vmatpush.msra.mxu3 %v528_v58 }
  0x54   : > { %365 = vmatmul.f32.gmra.mxu0 %v312_v47  ;;  %897 = vmatpush.msra.mxu3 %v527_v60 }
  0x55   : > { %430 = vmatmul.f32.gmra.mxu1 %v313_v48  ;;  %454 = vmatmul.f32.gmra.mxu3 %v329_v49 }
  0x56   : > { %898 = vmatpush.msra.mxu3 %v526_v62 }
  0x58   : > { %899 = vmatpush.msra.mxu3 %v525_v63 }
  0x5a   : > { %900 = vmatpush.msra.mxu3 %v524_v0  ;;  %v934_v0 = vld [vmem:[%s1430_s3] ss:$0 sm:$0xff] }
  0x5c   : > { %368 = vmatmul.f32.gmra.mxu0 %v314_v50  ;;  %901 = vmatpush.msra.mxu3 %v523_v2 }
  0x5d   : > { %433 = vmatmul.f32.gmra.mxu1 %v315_v51  ;;  %457 = vmatmul.f32.gmra.mxu3 %v331_v52 }
  0x5e   : > { %902 = vmatpush.msra.mxu3 %v522_v4 }
  0x60   : > { %903 = vmatpush.msra.mxu3 %v521_v5 }
  0x62   : > { %904 = vmatpush.msra.mxu3 %v520_v6 }
  0x64   : > { %371 = vmatmul.f32.gmra.mxu0 %v316_v53  ;;  %905 = vmatpush.msra.mxu3 %v519_v8 }
  0x65   : > { %436 = vmatmul.f32.gmra.mxu1 %v317_v54  ;;  %460 = vmatmul.f32.gmra.mxu3 %v333_v55 }
  0x66   : > { %906 = vmatpush.msra.mxu3 %v518_v10 }
  0x68   : > { %907 = vmatpush.msra.mxu3 %v517_v11 }
  0x6a   : > { %908 = vmatpush.msra.mxu3 %v516_v14 }
  0x6c   : > { %374 = vmatmul.f32.gmra.mxu0 %v318_v59  ;;  %909 = vmatpush.msra.mxu3 %v515_v15 }
  0x6d   : > { %439 = vmatmul.f32.gmra.mxu1 %v319_v61 }
  0x74   : > { %377 = vmatmul.f32.gmra.mxu0 %v320_v1 }
  0x75   : > { %442 = vmatmul.f32.gmra.mxu1 %v321_v3 }
  0x7c   : > { %380 = vmatmul.f32.gmra.mxu0 %v322_v7 }
  0x7d   : > { %445 = vmatmul.f32.gmra.mxu1 %v323_v9 }
  0x84   : > { %383 = vmatmul.f32.gmra.mxu0 %v324_v12 }
  0x85   : > { %448 = vmatmul.f32.gmra.mxu1 %v325_v13 }
  0xa9   : > { %v351_v16 = vpop.f32.mrf.mxu0 }
  0xaa   : > { %v416_v17 = vpop.f32.mrf.mxu1 }
  0xab   : > { %v417_v18 = vadd.f32 %v416_v17, %v351_v16 }
  0xad   : > { %551 = vmatmul.f32.vlgmr.msra.gmra.mxu2 %v417_v18 }
  0xb0   : > { %v387_v19 = vpop.f32.mrf.mxu3 }
  0xb1   : > { %v354_v20 = vpop.f32.mrf.mxu0 }
  0xb2   : > { %v419_v21 = vpop.f32.mrf.mxu1 }
  0xb3   : > { %v420_v22 = vadd.f32 %v419_v21, %v354_v20 }
  0xb5   : > { %554 = vmatmul.f32.gmra.mxu2 %v420_v22 }
  0xb8   : > { %v390_v23 = vpop.f32.mrf.mxu3 }
  0xb9   : > { %v357_v24 = vpop.f32.mrf.mxu0 }
  0xba   : > { %v422_v25 = vpop.f32.mrf.mxu1 }
  0xbb   : > { %v423_v26 = vadd.f32 %v422_v25, %v357_v24 }
  0xbd   : > { %557 = vmatmul.f32.gmra.mxu2 %v423_v26 }
  0xc0   : > { %v393_v27 = vpop.f32.mrf.mxu3 }
  0xc1   : > { %v360_v28 = vpop.f32.mrf.mxu0 }
  0xc2   : > { %v425_v29 = vpop.f32.mrf.mxu1 }
  0xc3   : > { %v426_v30 = vadd.f32 %v425_v29, %v360_v28 }
  0xc5   : > { %560 = vmatmul.f32.gmra.mxu2 %v426_v30 }
  0xc8   : > { %v396_v31 = vpop.f32.mrf.mxu3 }
  0xc9   : > { %v363_v32 = vpop.f32.mrf.mxu0 }
  0xca   : > { %v428_v33 = vpop.f32.mrf.mxu1 }
  0xcb   : > { %v429_v34 = vadd.f32 %v428_v33, %v363_v32 }
  0xcd   : > { %563 = vmatmul.f32.gmra.mxu2 %v429_v34 }
  0xd0   : > { %v452_v35 = vpop.f32.mrf.mxu3 }
  0xd1   : > { %v453_v36 = vadd.f32 %v452_v35, %v387_v19  ;;  %v366_v37 = vpop.f32.mrf.mxu0 }
  0xd2   : > { %v431_v38 = vpop.f32.mrf.mxu1 }
  0xd3   : > { %v432_v39 = vadd.f32 %v431_v38, %v366_v37  ;;  %587 = vmatmul.f32.vlgmr.msra.gmra.mxu3 %v453_v36 }
  0xd5   : > { %566 = vmatmul.f32.gmra.mxu2 %v432_v39 }
  0xd8   : > { %v455_v40 = vpop.f32.mrf.mxu3 }
  0xd9   : > { %v369_v41 = vpop.f32.mrf.mxu0  ;;  %v456_v42 = vadd.f32 %v455_v40, %v390_v23 }
  0xda   : > { %v434_v43 = vpop.f32.mrf.mxu1 }
  0xdb   : > { %v435_v44 = vadd.f32 %v434_v43, %v369_v41  ;;  %590 = vmatmul.f32.gmra.mxu3 %v456_v42 }
  0xdd   : > { %569 = vmatmul.f32.gmra.mxu2 %v435_v44 }
  0xe0   : > { %v458_v45 = vpop.f32.mrf.mxu3 }
  0xe1   : > { %v372_v46 = vpop.f32.mrf.mxu0  ;;  %v459_v47 = vadd.f32 %v458_v45, %v393_v27 }
  0xe2   : > { %v437_v48 = vpop.f32.mrf.mxu1 }
  0xe3   : > { %v438_v49 = vadd.f32 %v437_v48, %v372_v46  ;;  %593 = vmatmul.f32.gmra.mxu3 %v459_v47 }
  0xe5   : > { %572 = vmatmul.f32.gmra.mxu2 %v438_v49 }
  0xe8   : > { %v461_v50 = vpop.f32.mrf.mxu3 }
  0xe9   : > { %v375_v51 = vpop.f32.mrf.mxu0  ;;  %v462_v52 = vadd.f32 %v461_v50, %v396_v31 }
  0xea   : > { %v440_v53 = vpop.f32.mrf.mxu1 }
  0xeb   : > { %v441_v54 = vadd.f32 %v440_v53, %v375_v51  ;;  %596 = vmatmul.f32.gmra.mxu3 %v462_v52 }
  0xed   : > { %575 = vmatmul.f32.gmra.mxu2 %v441_v54 }
  0xf1   : > { %v378_v55 = vpop.f32.mrf.mxu0 }
  0xf2   : > { %v443_v56 = vpop.f32.mrf.mxu1 }
  0xf3   : > { %v444_v57 = vadd.f32 %v443_v56, %v378_v55 }
  0xf5   : > { %578 = vmatmul.f32.gmra.mxu2 %v444_v57 }
  0xf9   : > { %v381_v58 = vpop.f32.mrf.mxu0 }
  0xfa   : > { %v446_v59 = vpop.f32.mrf.mxu1 }
  0xfb   : > { %v447_v60 = vadd.f32 %v446_v59, %v381_v58 }
  0xfd   : > { %581 = vmatmul.f32.gmra.mxu2 %v447_v60 }
 0x101   : > { %v384_v61 = vpop.f32.mrf.mxu0 }
 0x102   : > { %v449_v62 = vpop.f32.mrf.mxu1 }
 0x103   : > { %v450_v63 = vadd.f32 %v449_v62, %v384_v61 }
 0x105   : > { %584 = vmatmul.f32.gmra.mxu2 %v450_v63 }
 0x130   : > { %v552_v1 = vpop.f32.mrf.mxu2 }
 0x131   : > { %v553_v2 = vadd.f32 %v934_v0, %v552_v1 }
 0x133   : > { %600 = vmax.xlane.f32.xlu0 %v553_v2 }
 0x138   : > { %v555_v3 = vpop.f32.mrf.mxu2 }
 0x139   : > { %v556_v4 = vadd.f32 %v934_v0, %v555_v3 }
 0x13b   : > { %602 = vmax.xlane.f32.xlu0 %v556_v4 }
 0x140   : > { %v558_v5 = vpop.f32.mrf.mxu2 }
 0x141   : > { %v559_v6 = vadd.f32 %v934_v0, %v558_v5 }
 0x143   : > { %604 = vmax.xlane.f32.xlu1 %v559_v6 }
 0x148   : > { %v561_v7 = vpop.f32.mrf.mxu2 }
 0x149   : > { %v562_v8 = vadd.f32 %v934_v0, %v561_v7 }
 0x14b   : > { %606 = vmax.xlane.f32.xlu1 %v562_v8 }
 0x150   : > { %v564_v9 = vpop.f32.mrf.mxu2 }
 0x151   : > { %v565_v10 = vadd.f32 %v934_v0, %v564_v9 }
 0x153   : > { %608 = vmax.xlane.f32.xlu2 %v565_v10 }
 0x156   : > { %v588_v11 = vpop.f32.mrf.mxu3 }
 0x157   : > { %v589_v12 = vadd.f32 %v934_v0, %v588_v11 }
 0x158   : > { %v567_v13 = vpop.f32.mrf.mxu2 }
 0x159   : > { %v568_v14 = vadd.f32 %v934_v0, %v567_v13  ;;  %624 = vmax.xlane.f32.xlu0 %v589_v12 }
 0x15b   : > { %610 = vmax.xlane.f32.xlu2 %v568_v14 }
 0x15e   : > { %v591_v19 = vpop.f32.mrf.mxu3 }
 0x15f   : > { %v1314_v30 = vadd.f32 %v934_v0, %v591_v19 }
 0x160   : > { %v570_v15 = vpop.f32.mrf.mxu2 }
 0x161   : > { %v1296_v16 = vadd.f32 %v934_v0, %v570_v15 }
 0x163   : > { %612 = vmax.xlane.f32.xlu0 %v1296_v16 }
 0x166   : > { %v594_v22 = vpop.f32.mrf.mxu3 }
 0x167   : > { %v1320_v32 = vadd.f32 %v934_v0, %v594_v22 }
 0x168   : > { %v573_v17 = vpop.f32.mrf.mxu2 }
 0x169   : > { %v1299_v18 = vadd.f32 %v934_v0, %v573_v17 }
 0x16b   : > { %614 = vmax.xlane.f32.xlu1 %v1299_v18 }
 0x16e   : > { %v597_v25 = vpop.f32.mrf.mxu3 }
 0x16f   : > { %v1308_v27 = vadd.f32 %v934_v0, %v597_v25 }
 0x170   : > { %v576_v20 = vpop.f32.mrf.mxu2 }
 0x171   : > { %v1302_v21 = vadd.f32 %v934_v0, %v576_v20 }
 0x173   : > { %616 = vmax.xlane.f32.xlu2 %v1302_v21 }
 0x178   : > { %v579_v23 = vpop.f32.mrf.mxu2 }
 0x179   : > { %v1305_v24 = vadd.f32 %v934_v0, %v579_v23 }
 0x17b   : > { %618 = vmax.xlane.f32.xlu0 %v1305_v24 }
 0x180   : > { %v582_v26 = vpop.f32.mrf.mxu2 }
 0x181   : > { %v1310_v28 = vadd.f32 %v934_v0, %v582_v26 }
 0x183   : > { %630 = vmax.xlane.f32.xlu0 %v1308_v27  ;;  %620 = vmax.xlane.f32.xlu1 %v1310_v28 }
 0x188   : > { %v585_v29 = vpop.f32.mrf.mxu2 }
 0x189   : > { %v1316_v31 = vadd.f32 %v934_v0, %v585_v29 }
 0x18b   : > { %626 = vmax.xlane.f32.xlu1 %v1314_v30  ;;  %622 = vmax.xlane.f32.xlu2 %v1316_v31 }
 0x193   : > { %628 = vmax.xlane.f32.xlu2 %v1320_v32 }
 0x1a6   : > { %v601_v33 = vpop.xlane.xlu0 %600 }
 0x1a7   : > { %v1323_v34 = vsub.f32 %v553_v2, %v601_v33 }
 0x1a9   : > { %v648_v35 = vmul.f32 1.442695, %v1323_v34 }
 0x1ab   : > { %935 = vpow2.f32 %v648_v35 }
 0x1ae   : > { %v603_v36 = vpop.xlane.xlu0 %602 }
 0x1af   : > { %v1326_v37 = vsub.f32 %v556_v4, %v603_v36 }
 0x1b1   : > { %v936_v38 = vpop.eup %935  ;;  %v650_v39 = vmul.f32 1.442695, %v1326_v37 }
 0x1b2   : > { %680 = vadd.xlane.f32.xlu1 %v936_v38 }
 0x1b3   : > { %937 = vpow2.f32 %v650_v39 }
 0x1b6   : > { %v605_v40 = vpop.xlane.xlu1 %604 }
 0x1b7   : > { %v1329_v41 = vsub.f32 %v559_v6, %v605_v40 }
 0x1b9   : > { %v938_v42 = vpop.eup %937  ;;  %v652_v43 = vmul.f32 1.442695, %v1329_v41 }
 0x1ba   : > { %682 = vadd.xlane.f32.xlu2 %v938_v42 }
 0x1bb   : > { %939 = vpow2.f32 %v652_v43 }
 0x1be   : > { %v607_v44 = vpop.xlane.xlu1 %606 }
 0x1bf   : > { %v1332_v45 = vsub.f32 %v562_v8, %v607_v44 }
 0x1c1   : > { %v940_v46 = vpop.eup %939  ;;  %v654_v47 = vmul.f32 1.442695, %v1332_v45 }
 0x1c2   : > { %684 = vadd.xlane.f32.xlu0 %v940_v46 }
 0x1c3   : > { %941 = vpow2.f32 %v654_v47 }
 0x1c6   : > { %v609_v48 = vpop.xlane.xlu2 %608 }
 0x1c7   : > { %v1335_v49 = vsub.f32 %v565_v10, %v609_v48 }
 0x1c9   : > { %v942_v50 = vpop.eup %941  ;;  %v656_v51 = vmul.f32 1.442695, %v1335_v49 }
 0x1ca   : > { %686 = vadd.xlane.f32.xlu1 %v942_v50 }
 0x1cb   : > { %943 = vpow2.f32 %v656_v51 }
 0x1cc   : > { %v625_v52 = vpop.xlane.xlu0 %624 }
 0x1cd   : > { %v1338_v53 = vsub.f32 %v589_v12, %v625_v52 }
 0x1ce   : > { %v611_v54 = vpop.xlane.xlu2 %610 }
 0x1cf   : > { %v672_v55 = vmul.f32 1.442695, %v1338_v53  ;;  %v1341_v56 = vsub.f32 %v568_v14, %v611_v54 }
 0x1d1   : > { %v944_v57 = vpop.eup %943  ;;  %945 = vpow2.f32 %v672_v55  ;;  %v658_v58 = vmul.f32 1.442695, %v1341_v56 }
 0x1d2   : > { %688 = vadd.xlane.f32.xlu2 %v944_v57 }
 0x1d3   : > { %947 = vpow2.f32 %v658_v58 }
 0x1d6   : > { %v613_v59 = vpop.xlane.xlu0 %612 }
 0x1d7   : > { %v946_v60 = vpop.eup %945  ;;  %v1345_v61 = vsub.f32 %v1296_v16, %v613_v59 }
 0x1d8   : > { %704 = vadd.xlane.f32.xlu1 %v946_v60 }
 0x1d9   : > { %v948_v62 = vpop.eup %947  ;;  %v660_v63 = vmul.f32 1.442695, %v1345_v61 }
 0x1da   : > { %690 = vadd.xlane.f32.xlu0 %v948_v62 }
 0x1db   : > { %949 = vpow2.f32 %v660_v63 }
 0x1de   : > { %v615_v0 = vpop.xlane.xlu1 %614 }
 0x1df   : > { %v1349_v1 = vsub.f32 %v1299_v18, %v615_v0 }
 0x1e1   : > { %v950_v2 = vpop.eup %949  ;;  %v662_v3 = vmul.f32 1.442695, %v1349_v1 }
 0x1e2   : > { %692 = vadd.xlane.f32.xlu1 %v950_v2 }
 0x1e3   : > { %951 = vpow2.f32 %v662_v3 }
 0x1e6   : > { %v617_v4 = vpop.xlane.xlu2 %616 }
 0x1e7   : > { %v1353_v5 = vsub.f32 %v1302_v21, %v617_v4 }
 0x1e9   : > { %v952_v6 = vpop.eup %951  ;;  %v664_v7 = vmul.f32 1.442695, %v1353_v5 }
 0x1ea   : > { %694 = vadd.xlane.f32.xlu2 %v952_v6 }
 0x1eb   : > { %953 = vpow2.f32 %v664_v7 }
 0x1ee   : > { %v619_v8 = vpop.xlane.xlu0 %618 }
 0x1ef   : > { %v1357_v9 = vsub.f32 %v1305_v24, %v619_v8 }
 0x1f1   : > { %v954_v10 = vpop.eup %953  ;;  %v666_v11 = vmul.f32 1.442695, %v1357_v9 }
 0x1f2   : > { %696 = vadd.xlane.f32.xlu0 %v954_v10 }
 0x1f3   : > { %955 = vpow2.f32 %v666_v11 }
 0x1f6   : > { %v631_v12 = vpop.xlane.xlu0 %630  ;;  %v621_v13 = vpop.xlane.xlu1 %620 }
 0x1f7   : > { %v1361_v14 = vsub.f32 %v1308_v27, %v631_v12  ;;  %v1364_v15 = vsub.f32 %v1310_v28, %v621_v13 }
 0x1f9   : > { %v956_v16 = vpop.eup %955  ;;  %v678_v17 = vmul.f32 1.442695, %v1361_v14  ;;  %v668_v18 = vmul.f32 1.442695, %v1364_v15 }
 0x1fa   : > { %698 = vadd.xlane.f32.xlu1 %v956_v16 }
 0x1fb   : > { %957 = vpow2.f32 %v678_v17 }
 0x1fc   : > { %959 = vpow2.f32 %v668_v18 }
 0x1fe   : > { %v627_v19 = vpop.xlane.xlu1 %626  ;;  %v623_v20 = vpop.xlane.xlu2 %622 }
 0x1ff   : > { %v1369_v21 = vsub.f32 %v1314_v30, %v627_v19  ;;  %v1372_v22 = vsub.f32 %v1316_v31, %v623_v20 }
 0x201   : > { %v958_v23 = vpop.eup %957  ;;  %v674_v24 = vmul.f32 1.442695, %v1369_v21  ;;  %v670_v25 = vmul.f32 1.442695, %v1372_v22 }
 0x202   : > { %v960_v26 = vpop.eup %959  ;;  %710 = vadd.xlane.f32.xlu1 %v958_v23 }
 0x203   : > { %961 = vpow2.f32 %v674_v24  ;;  %700 = vadd.xlane.f32.xlu2 %v960_v26 }
 0x204   : > { %963 = vpow2.f32 %v670_v25 }
 0x206   : > { %v629_v27 = vpop.xlane.xlu2 %628 }
 0x207   : > { %v1377_v28 = vsub.f32 %v1320_v32, %v629_v27 }
 0x209   : > { %v962_v29 = vpop.eup %961  ;;  %v676_v30 = vmul.f32 1.442695, %v1377_v28 }
 0x20a   : > { %v964_v31 = vpop.eup %963 }
 0x20b   : > { %965 = vpow2.f32 %v676_v30  ;;  %706 = vadd.xlane.f32.xlu2 %v962_v29  ;;  %702 = vadd.xlane.f32.xlu0 %v964_v31 }
 0x211   : > { %v966_v33 = vpop.eup %965 }
 0x213   : > { %708 = vadd.xlane.f32.xlu0 %v966_v33 }
 0x225   : > { %v681_v35 = vpop.xlane.xlu1 %680 }
 0x226   : > { %967 = vlog2.f32 %v681_v35 }
 0x22c   : > { %v968_v36 = vpop.eup %967 }
 0x22d   : > { %v713_v38 = vmul.f32 0.6931472, %v968_v36  ;;  %v683_v39 = vpop.xlane.xlu2 %682 }
 0x22e   : > { %969 = vlog2.f32 %v683_v39 }
 0x22f   : > { %v744_v32 = vsub.f32 %v1323_v34, %v713_v38 }
 0x231   : > { %760 = vst [vmem:[%s1384_s11] sm:$0xff] %v744_v32 }
 0x234   : > { %v970_v40 = vpop.eup %969 }
 0x235   : > { %v715_v42 = vmul.f32 0.6931472, %v970_v40  ;;  %v685_v43 = vpop.xlane.xlu0 %684 }
 0x236   : > { %971 = vlog2.f32 %v685_v43 }
 0x237   : > { %v745_v44 = vsub.f32 %v1326_v37, %v715_v42 }
 0x239   : > { %761 = vst [vmem:[%s1384_s11 + $0x8] sm:$0xff] %v745_v44 }
 0x23c   : > { %v972_v46 = vpop.eup %971 }
 0x23d   : > { %v717_v47 = vmul.f32 0.6931472, %v972_v46  ;;  %v687_v48 = vpop.xlane.xlu1 %686 }
 0x23e   : > { %973 = vlog2.f32 %v687_v48 }
 0x23f   : > { %v746_v50 = vsub.f32 %v1329_v41, %v717_v47 }
 0x241   : > { %762 = vst [vmem:[%s1384_s11 + $0x10] sm:$0xff] %v746_v50 }
 0x244   : > { %v974_v51 = vpop.eup %973 }
 0x245   : > { %v719_v52 = vmul.f32 0.6931472, %v974_v51  ;;  %v689_v34 = vpop.xlane.xlu2 %688 }
 0x246   : > { %975 = vlog2.f32 %v689_v34 }
 0x247   : > { %v747_v54 = vsub.f32 %v1332_v45, %v719_v52 }
 0x249   : > { %763 = vst [vmem:[%s1384_s11 + $0x18] sm:$0xff] %v747_v54 }
 0x24b   : > { %v705_v55 = vpop.xlane.xlu1 %704 }
 0x24c   : > { %v976_v57 = vpop.eup %975  ;;  %977 = vlog2.f32 %v705_v55 }
 0x24d   : > { %v721_v37 = vmul.f32 0.6931472, %v976_v57  ;;  %v691_v58 = vpop.xlane.xlu0 %690 }
 0x24e   : > { %979 = vlog2.f32 %v691_v58 }
 0x24f   : > { %v748_v59 = vsub.f32 %v1335_v49, %v721_v37 }
 0x251   : > { %764 = vst [vmem:[%s1384_s11 + $0x20] sm:$0xff] %v748_v59 }
 0x252   : > { %v978_v41 = vpop.eup %977 }
 0x253   : > { %v737_v60 = vmul.f32 0.6931472, %v978_v41 }
 0x254   : > { %v980_v62 = vpop.eup %979 }
 0x255   : > { %v756_v63 = vsub.f32 %v1338_v53, %v737_v60  ;;  %v723_v0 = vmul.f32 0.6931472, %v980_v62  ;;  %v693_v45 = vpop.xlane.xlu1 %692 }
 0x256   : > { %981 = vlog2.f32 %v693_v45 }
 0x257   : > { %772 = vst [vmem:[%s1384_s11 + $0x60] sm:$0xff] %v756_v63  ;;  %v749_v2 = vsub.f32 %v1341_v56, %v723_v0 }
 0x259   : > { %765 = vst [vmem:[%s1384_s11 + $0x28] sm:$0xff] %v749_v2 }
 0x25c   : > { %v982_v3 = vpop.eup %981 }
 0x25d   : > { %v725_v4 = vmul.f32 0.6931472, %v982_v3  ;;  %v695_v6 = vpop.xlane.xlu2 %694 }
 0x25e   : > { %983 = vlog2.f32 %v695_v6 }
 0x25f   : > { %v750_v49 = vsub.f32 %v1345_v61, %v725_v4 }
 0x261   : > { %766 = vst [vmem:[%s1384_s11 + $0x30] sm:$0xff] %v750_v49 }
 0x264   : > { %v984_v7 = vpop.eup %983 }
 0x265   : > { %v727_v8 = vmul.f32 0.6931472, %v984_v7  ;;  %v697_v10 = vpop.xlane.xlu0 %696 }
 0x266   : > { %985 = vlog2.f32 %v697_v10 }
 0x267   : > { %v751_v53 = vsub.f32 %v1349_v1, %v727_v8 }
 0x269   : > { %767 = vst [vmem:[%s1384_s11 + $0x38] sm:$0xff] %v751_v53 }
 0x26c   : > { %v986_v11 = vpop.eup %985 }
 0x26d   : > { %v729_v12 = vmul.f32 0.6931472, %v986_v11  ;;  %v699_v56 = vpop.xlane.xlu1 %698 }
 0x26e   : > { %987 = vlog2.f32 %v699_v56 }
 0x26f   : > { %v752_v13 = vsub.f32 %v1353_v5, %v729_v12 }
 0x271   : > { %768 = vst [vmem:[%s1384_s11 + $0x40] sm:$0xff] %v752_v13 }
 0x274   : > { %v988_v16 = vpop.eup %987 }
 0x275   : > { %v731_v17 = vmul.f32 0.6931472, %v988_v16  ;;  %v711_v18 = vpop.xlane.xlu1 %710 }
 0x276   : > { %989 = vlog2.f32 %v711_v18  ;;  %v701_v61 = vpop.xlane.xlu2 %700 }
 0x277   : > { %v753_v19 = vsub.f32 %v1357_v9, %v731_v17  ;;  %991 = vlog2.f32 %v701_v61 }
 0x279   : > { %769 = vst [vmem:[%s1384_s11 + $0x48] sm:$0xff] %v753_v19 }
 0x27c   : > { %v990_v1 = vpop.eup %989 }
 0x27d   : > { %v992_v20 = vpop.eup %991  ;;  %v743_v23 = vmul.f32 0.6931472, %v990_v1 }
 0x27e   : > { %v733_v24 = vmul.f32 0.6931472, %v992_v20  ;;  %v703_v25 = vpop.xlane.xlu0 %702  ;;  %v707_v26 = vpop.xlane.xlu2 %706 }
 0x27f   : > { %v759_v5 = vsub.f32 %v1361_v14, %v743_v23  ;;  %993 = vlog2.f32 %v703_v25 }
 0x280   : > { %v754_v27 = vsub.f32 %v1364_v15, %v733_v24  ;;  %995 = vlog2.f32 %v707_v26 }
 0x281   : > { %775 = vst [vmem:[%s1384_s11 + $0x78] sm:$0xff] %v759_v5 }
 0x282   : > { %770 = vst [vmem:[%s1384_s11 + $0x50] sm:$0xff] %v754_v27 }
 0x285   : > { %v994_v9 = vpop.eup %993 }
 0x286   : > { %v996_v29 = vpop.eup %995  ;;  %v735_v30 = vmul.f32 0.6931472, %v994_v9  ;;  %v709_v31 = vpop.xlane.xlu0 %708 }
 0x287   : > { %v739_v33 = vmul.f32 0.6931472, %v996_v29  ;;  %997 = vlog2.f32 %v709_v31 }
 0x288   : > { %v755_v35 = vsub.f32 %v1372_v22, %v735_v30 }
 0x289   : > { %v757_v36 = vsub.f32 %v1369_v21, %v739_v33 }
 0x28a   : > { %771 = vst [vmem:[%s1384_s11 + $0x58] sm:$0xff] %v755_v35 }
 0x28b   : > { %773 = vst [vmem:[%s1384_s11 + $0x68] sm:$0xff] %v757_v36 }
 0x28d   : > { %v998_v14 = vpop.eup %997 }
 0x28e   : > { %v741_v38 = vmul.f32 0.6931472, %v998_v14 }
 0x290   : > { %v758_v15 = vsub.f32 %v1377_v28, %v741_v38 }
 0x292   : > { %774 = vst [vmem:[%s1384_s11 + $0x70] sm:$0xff] %v758_v15 }
 0x293 PF: > { %s14_s17 = sadd.s32 1, %s1021_s17   ;;  %s1432_s15 = smov %s1017_s16 }
 0x294   : > { %p11_p5 = scmp.ge.s32.totalorder %s14_s17, 4   ;;  %s1433_s16 = smov %s1435_s18 }
 0x296   :  { %13 = sbr.rel (!%p11_p5) target bundleno = 2 (0x2), region = 75 }

</bundles_post_ra>
